<compile_context>
chip_gen: v7x
topology: tpu7x:2x2x1
jax: 0.10.0
libtpu: 0.0.40
codegen_flags: <defaults>
</compile_context>

<pallas_src>
import functools
import numpy as np

import jax
import jax.numpy as jnp
from jax import lax
from jax.experimental import pallas as pl
from jax.experimental.pallas import tpu as pltpu

# ---------------- config (small, consistent with the module) ----------------
N_EMBD = 32
N_HEAD = 4
N_LAYER = 2
N_CTX = 64
VOCAB = 128
LN_EPS = 1e-5


# ----------------------------- Pallas kernels --------------------------------
def _ln(x, g, b, eps):
    mean = jnp.mean(x, axis=-1, keepdims=True)
    var = jnp.mean(jnp.square(x - mean), axis=-1, keepdims=True)
    return (x - mean) * lax.rsqrt(var + eps) * g + b


def _block_kernel(h_ref, mask_ref,
                  ln1_g, ln1_b, attn_w, attn_b, proj_w, proj_b,
                  ln2_g, ln2_b, fc_w, fc_b, mproj_w, mproj_b,
                  o_ref, *, n_head, scale, eps):
    """One fused GPT2 Block for one batch element; everything stays in VMEM."""
    h = h_ref[0]                                    # (T, E)
    T, E = h.shape
    Dh = E // n_head

    # ---- ln_1 + qkv projection (Conv1D) -------------------------------------
    x = _ln(h, ln1_g[...], ln1_b[...], eps)
    qkv = jnp.dot(x, attn_w[...], preferred_element_type=jnp.float32) + attn_b[...]
    q = qkv[:, :E]
    k = qkv[:, E:2 * E]
    v = qkv[:, 2 * E:]

    # ---- per-head scaled, causally-masked attention (heads unrolled) --------
    row = lax.broadcasted_iota(jnp.int32, (T, T), 0)
    col = lax.broadcasted_iota(jnp.int32, (T, T), 1)
    causal = col <= row
    amask = mask_ref[0]                             # (1, T) additive 0 / -10000
    inv_sqrt_d = jnp.float32(1.0 / np.sqrt(Dh))
    heads = []
    for hh in range(n_head):
        lo = hh * Dh
        qh = q[:, lo:lo + Dh]
        kh = k[:, lo:lo + Dh]
        vh = v[:, lo:lo + Dh]
        w = jnp.dot(qh, kh.T, preferred_element_type=jnp.float32)
        if scale:
            w = w * inv_sqrt_d
        # exact GPT2 semantics: where(causal, w, -10000.0), then add attn mask
        w = jnp.where(causal, w, jnp.float32(-10000.0))
        w = w + amask
        w = w - jnp.max(w, axis=-1, keepdims=True)
        p = jnp.exp(w)
        p = p * pl.reciprocal(jnp.sum(p, axis=-1, keepdims=True), approx=True)
        heads.append(jnp.dot(p, vh, preferred_element_type=jnp.float32))
    a = jnp.concatenate(heads, axis=-1)             # (T, E)

    # ---- output projection + residual ----------------------------------------
    a = jnp.dot(a, proj_w[...], preferred_element_type=jnp.float32) + proj_b[...]
    h = h + a

    # ---- ln_2 + MLP (gelu_new) + residual -------------------------------------
    x = _ln(h, ln2_g[...], ln2_b[...], eps)
    m = jnp.dot(x, fc_w[...], preferred_element_type=jnp.float32) + fc_b[...]
    m = 0.5 * m * (1.0 + jnp.tanh(
        jnp.float32(np.sqrt(2.0 / np.pi)) * (m + 0.044715 * m ** 3)))
    m = jnp.dot(m, mproj_w[...], preferred_element_type=jnp.float32) + mproj_b[...]
    o_ref[0] = (h + m).astype(o_ref.dtype)


def transformer_block(h, p, add_mask, *, n_head=N_HEAD, scale=True, eps=LN_EPS):
    """Whole GPT2 Block fused into a single pallas_call; grid over the batch."""
    B, T, E = h.shape
    kernel = functools.partial(_block_kernel, n_head=n_head, scale=scale, eps=eps)

    def wspec(shape):
        nd = len(shape)
        return pl.BlockSpec(shape, lambda b, _nd=nd: (0,) * _nd)

    weights = [p["ln1_g"], p["ln1_b"], p["attn_w"], p["attn_b"],
               p["proj_w"], p["proj_b"], p["ln2_g"], p["ln2_b"],
               p["fc_w"], p["fc_b"], p["mproj_w"], p["mproj_b"]]
    return pl.pallas_call(
        kernel,
        out_shape=jax.ShapeDtypeStruct((B, T, E), jnp.float32),
        grid=(B,),
        in_specs=[pl.BlockSpec((1, T, E), lambda b: (b, 0, 0)),
                  pl.BlockSpec((1, 1, T), lambda b: (b, 0, 0))]
                 + [wspec(w.shape) for w in weights],
        out_specs=pl.BlockSpec((1, T, E), lambda b: (b, 0, 0)),
        compiler_params=pltpu.CompilerParams(
            dimension_semantics=("parallel",)),   # v7x: shard batch over 2 TCs
    )(h, add_mask, *weights)


def _layernorm_kernel(x_ref, g_ref, b_ref, o_ref, *, eps):
    o_ref[...] = _ln(x_ref[...], g_ref[...], b_ref[...], eps).astype(o_ref.dtype)


def layernorm(x2d, g, b, eps=LN_EPS):
    M, D = x2d.shape
    return pl.pallas_call(
        functools.partial(_layernorm_kernel, eps=eps),
        out_shape=jax.ShapeDtypeStruct((M, D), jnp.float32),
    )(x2d, g, b)


def _matmul_nobias_kernel(x_ref, w_ref, o_ref):
    o_ref[...] = jnp.dot(x_ref[...], w_ref[...],
                         preferred_element_type=jnp.float32).astype(o_ref.dtype)


def linear_nobias(x2d, w):
    """Single lane-dense (N = VOCAB = 128) matmul for lm_head / bow_head."""
    M, _ = x2d.shape
    _, N = w.shape
    return pl.pallas_call(
        _matmul_nobias_kernel,
        out_shape=jax.ShapeDtypeStruct((M, N), jnp.float32),
    )(x2d, w)


# --------------------------- model glue (plain JAX) ---------------------------
def speak_model_forward(params, conv_seq, token_type_seq, input_mask):
    """GPT2Model forward: token + position + token_type embeds, blocks, ln_f."""
    B, T = conv_seq.shape
    pos = jnp.arange(T)
    h = params["wte"][conv_seq] + params["wpe"][pos][None, :, :] + params["wte"][token_type_seq]
    add_mask = (1.0 - input_mask.astype(jnp.float32))[:, None, :] * jnp.float32(-10000.0)
    for blk in params["blocks"]:
        h = transformer_block(h, blk, add_mask)
    h = layernorm(h.reshape(B * T, N_EMBD),
                  params["lnf_g"], params["lnf_b"]).reshape(B, T, N_EMBD)
    return h


def plan_model_forward(params, sentence_hidden):
    """PlanModel (batched over the batch axis): wpe, one Block(scale=True), ln_f, MSE."""
    B, S, E = sentence_hidden.shape
    pos = jnp.arange(S)
    h = sentence_hidden + params["wpe"][pos][None, :, :]
    add_mask = jnp.zeros((B, 1, S), jnp.float32)    # PlanModel passes no attention_mask
    h = transformer_block(h, params["block"], add_mask)
    h = layernorm(h.reshape(B * S, E),
                  params["lnf_g"], params["lnf_b"]).reshape(B, S, E)
    # per-batch-element MSE (mirrors the per-j PlanModel call), then mean over B
    loss_plan = jnp.mean(
        jnp.mean(jnp.square(h[:, :-1, :] - sentence_hidden[:, 1:, :]), axis=(1, 2)))
    return h, loss_plan


def _segment_cross_entropy(logits, targets, valid):
    """CrossEntropyLoss(ignore_index handled via `valid`), mean per segment,
    then mean over segments and batch (matching the reference accumulation)."""
    logz = jax.nn.logsumexp(logits, axis=-1)
    safe_t = jnp.where(valid, targets, 0)
    picked = jnp.take_along_axis(logits, safe_t[..., None], axis=-1)[..., 0]
    nll = jnp.where(valid, logz - picked, 0.0)
    denom = jnp.maximum(jnp.sum(valid, axis=-1), 1)
    per_seg = jnp.sum(nll, axis=-1) / denom         # (B, n_seg)
    return jnp.mean(per_seg)


@jax.jit
def dpks_forward(params, conv_seq, label_seq, token_type_seq, input_mask,
                 sentence_idx, seg_pos, seg_valid):
    B, T = conv_seq.shape
    conv_hidden = speak_model_forward(params["speak"], conv_seq, token_type_seq, input_mask)

    # ---- PlanModel over gathered sentence-boundary hiddens (batched over B) --
    batch_col = jnp.arange(B)[:, None]
    sentence_hidden = conv_hidden[batch_col, sentence_idx]          # (B, S, E)
    plan_out, loss_plan = plan_model_forward(params["plan"], sentence_hidden)
    deltas = plan_out - sentence_hidden                             # (B, S, E)

    # ---- all padded segments in one shot -------------------------------------
    G, L = seg_pos.shape[1], seg_pos.shape[2]
    batch_idx = jnp.arange(B)[:, None, None]
    seg_hidden = conv_hidden[batch_idx, seg_pos]                    # (B, G, L, E)
    seg_ids = conv_seq[batch_idx, seg_pos]                          # (B, G, L)
    seg_labels = label_seq[batch_idx, seg_pos]                      # (B, G, L)
    seg_deltas = deltas[:, :G, :]                                   # (B, G, E)

    lm_in = jnp.concatenate(
        [jnp.broadcast_to(seg_deltas[:, :, None, :], (B, G, L, N_EMBD)), seg_hidden],
        axis=-1).reshape(B * G * L, 2 * N_EMBD)
    lm_logits = linear_nobias(lm_in, params["lm_head_w"]).reshape(B, G, L, VOCAB)
    bow_logits = linear_nobias(seg_deltas.reshape(B * G, N_EMBD),
                               params["bow_head_w"]).reshape(B, G, VOCAB)

    valid_next = seg_valid[:, :, 1:] > 0.5                          # (B, G, L-1)
    gen_targets = seg_labels[:, :, 1:]
    gen_valid = valid_next & (gen_targets != -100)
    loss_gen = _segment_cross_entropy(lm_logits[:, :, :-1, :], gen_targets, gen_valid)

    bow_exp = jnp.broadcast_to(bow_logits[:, :, None, :], (B, G, L - 1, VOCAB))
    loss_bow = _segment_cross_entropy(bow_exp, seg_ids[:, :, 1:], valid_next)

    total = loss_gen + loss_plan + loss_bow
    return total, loss_gen, loss_plan, loss_bow


def build_segment_meta(sentence_idx_np):
    """Host-side: turn ragged sentence segments into static padded gather indices."""
    # TODO(synk): sentence_idx-driven segment slicing is data-dependent Python control
    # flow in the reference model; it is preprocessed host-side into padded gather
    # indices + validity masks so the jitted/Pallas path sees only static shapes.
    sidx = np.asarray(sentence_idx_np, np.int32)
    B, S = sidx.shape
    G = S - 1
    lens = sidx[:, 1:] + 1 - sidx[:, :-1]
    L = int(lens.max())
    pos = np.zeros((B, G, L), np.int32)
    valid = np.zeros((B, G, L), np.float32)
    for j in range(B):
        for i in range(G):
            n = int(lens[j, i])
            pos[j, i, :n] = np.arange(sidx[j, i], sidx[j, i] + n)
            valid[j, i, :n] = 1.0
    return jnp.asarray(pos), jnp.asarray(valid)


# ------------------------------ parameter init --------------------------------
def init_params(key):
    kit = iter(jax.random.split(key, 256))

    def nrm(shape, std=0.02):
        return jax.random.normal(next(kit), shape, jnp.float32) * std

    def block_params(n_embd):
        inner = 4 * n_embd
        return dict(
            ln1_g=jnp.ones((1, n_embd), jnp.float32), ln1_b=jnp.zeros((1, n_embd), jnp.float32),
            attn_w=nrm((n_embd, 3 * n_embd)), attn_b=jnp.zeros((1, 3 * n_embd), jnp.float32),
            proj_w=nrm((n_embd, n_embd)), proj_b=jnp.zeros((1, n_embd), jnp.float32),
            ln2_g=jnp.ones((1, n_embd), jnp.float32), ln2_b=jnp.zeros((1, n_embd), jnp.float32),
            fc_w=nrm((n_embd, inner)), fc_b=jnp.zeros((1, inner), jnp.float32),
            mproj_w=nrm((inner, n_embd)), mproj_b=jnp.zeros((1, n_embd), jnp.float32),
        )

    speak = dict(
        wte=nrm((VOCAB, N_EMBD)),
        wpe=nrm((N_CTX, N_EMBD)),
        blocks=[block_params(N_EMBD) for _ in range(N_LAYER)],
        lnf_g=jnp.ones((1, N_EMBD), jnp.float32), lnf_b=jnp.zeros((1, N_EMBD), jnp.float32),
    )
    plan = dict(
        wpe=nrm((256, N_EMBD)),
        block=block_params(N_EMBD),
        lnf_g=jnp.ones((1, N_EMBD), jnp.float32), lnf_b=jnp.zeros((1, N_EMBD), jnp.float32),
    )
    return dict(
        speak=speak,
        plan=plan,
        lm_head_w=nrm((2 * N_EMBD, VOCAB)),   # Linear(2E -> V), bias=False
        bow_head_w=nrm((N_EMBD, VOCAB)),      # Linear(E -> V), bias=False
    )


# ----------------------------------- main --------------------------------------
if __name__ == "__main__":
    key = jax.random.PRNGKey(0)
    pkey, dkey = jax.random.split(key)
    params = init_params(pkey)

    B, T = 2, 16
    k1, k2, k3 = jax.random.split(dkey, 3)
    conv_seq = jax.random.randint(k1, (B, T), 0, VOCAB, dtype=jnp.int32)
    token_type_seq = jax.random.randint(k2, (B, T), 0, VOCAB, dtype=jnp.int32)
    label_seq = jnp.where(jax.random.uniform(k3, (B, T)) < 0.2, -100, conv_seq)
    input_mask = jnp.ones((B, T), jnp.int32).at[1, 14:].set(0)
    # sentence boundary indices (host-side static data, as in the reference loop)
    sentence_idx_np = np.array([[0, 5, 10, 15], [0, 4, 9, 15]], dtype=np.int32)
    seg_pos, seg_valid = build_segment_meta(sentence_idx_np)
    sentence_idx = jnp.asarray(sentence_idx_np)

    total, lg, lp, lb = dpks_forward(
        params, conv_seq, label_seq, token_type_seq, input_mask,
        sentence_idx, seg_pos, seg_valid)
    jax.block_until_ready(total)
    assert np.isfinite(float(total)), "non-finite loss"
    print("KERNEL_OK")
</pallas_src>

<mosaic_0001>
module attributes {stable_mosaic.version = 11 : i64} {
  func.func @_layernorm_kernel(%arg0: memref<32x32xf32, #tpu.memory_space<vmem>>, %arg1: memref<1x32xf32, #tpu.memory_space<vmem>>, %arg2: memref<1x32xf32, #tpu.memory_space<vmem>>, %arg3: memref<32x32xf32, #tpu.memory_space<vmem>>) attributes {dimension_semantics = [], scalar_prefetch = 0 : i64, scratch_operands = 0 : i64, tpu.core_type = #tpu.core_type<tc>} {
    %c0 = arith.constant 0 : index
    %c0_0 = arith.constant 0 : index
    %0 = vector.load %arg0[%c0, %c0_0] : memref<32x32xf32, #tpu.memory_space<vmem>>, vector<32x32xf32>
    %c0_1 = arith.constant 0 : index
    %c0_2 = arith.constant 0 : index
    %1 = vector.load %arg1[%c0_1, %c0_2] : memref<1x32xf32, #tpu.memory_space<vmem>>, vector<1x32xf32>
    %c0_3 = arith.constant 0 : index
    %c0_4 = arith.constant 0 : index
    %2 = vector.load %arg2[%c0_3, %c0_4] : memref<1x32xf32, #tpu.memory_space<vmem>>, vector<1x32xf32>
    %cst = arith.constant dense<0.000000e+00> : vector<32xf32>
    %3 = vector.multi_reduction <add>, %0, %cst [1] : vector<32x32xf32> to vector<32xf32>
    %4 = vector.shape_cast %3 : vector<32xf32> to vector<32x1xf32>
    %cst_5 = arith.constant 3.200000e+01 : f32
    %5 = vector.broadcast %cst_5 : f32 to vector<32x1xf32>
    %6 = arith.divf %4, %5 : vector<32x1xf32>
    %7 = vector.broadcast %6 : vector<32x1xf32> to vector<32x32xf32>
    %8 = arith.subf %0, %7 : vector<32x32xf32>
    %9 = arith.mulf %8, %8 : vector<32x32xf32>
    %cst_6 = arith.constant dense<0.000000e+00> : vector<32xf32>
    %10 = vector.multi_reduction <add>, %9, %cst_6 [1] : vector<32x32xf32> to vector<32xf32>
    %11 = vector.shape_cast %10 : vector<32xf32> to vector<32x1xf32>
    %cst_7 = arith.constant 3.200000e+01 : f32
    %12 = vector.broadcast %cst_7 : f32 to vector<32x1xf32>
    %13 = arith.divf %11, %12 : vector<32x1xf32>
    %14 = vector.broadcast %6 : vector<32x1xf32> to vector<32x32xf32>
    %15 = arith.subf %0, %14 : vector<32x32xf32>
    %cst_8 = arith.constant 9.99999974E-6 : f32
    %16 = vector.broadcast %cst_8 : f32 to vector<32x1xf32>
    %17 = arith.addf %13, %16 : vector<32x1xf32>
    %18 = math.rsqrt %17 : vector<32x1xf32>
    %19 = vector.broadcast %18 : vector<32x1xf32> to vector<32x32xf32>
    %20 = arith.mulf %15, %19 : vector<32x32xf32>
    %21 = vector.broadcast %1 : vector<1x32xf32> to vector<32x32xf32>
    %22 = arith.mulf %20, %21 : vector<32x32xf32>
    %23 = vector.broadcast %2 : vector<1x32xf32> to vector<32x32xf32>
    %24 = arith.addf %22, %23 : vector<32x32xf32>
    %c0_9 = arith.constant 0 : index
    %c0_10 = arith.constant 0 : index
    %25 = vector.load %arg3[%c0_9, %c0_10] : memref<32x32xf32, #tpu.memory_space<vmem>>, vector<32x32xf32>
    tpu.vector_store %arg3[%c0_9, %c0_10], %24 {strides = array<i32>} : memref<32x32xf32, #tpu.memory_space<vmem>>, vector<32x32xf32>,
    return
  }
}

module attributes {stable_mosaic.version = 11 : i64} {
  func.func @_block_kernel(%arg0: i32, %arg1: memref<1x16x32xf32, #tpu.memory_space<vmem>>, %arg2: memref<1x1x16xf32, #tpu.memory_space<vmem>>, %arg3: memref<1x32xf32, #tpu.memory_space<vmem>>, %arg4: memref<1x32xf32, #tpu.memory_space<vmem>>, %arg5: memref<32x96xf32, #tpu.memory_space<vmem>>, %arg6: memref<1x96xf32, #tpu.memory_space<vmem>>, %arg7: memref<32x32xf32, #tpu.memory_space<vmem>>, %arg8: memref<1x32xf32, #tpu.memory_space<vmem>>, %arg9: memref<1x32xf32, #tpu.memory_space<vmem>>, %arg10: memref<1x32xf32, #tpu.memory_space<vmem>>, %arg11: memref<32x128xf32, #tpu.memory_space<vmem>>, %arg12: memref<1x128xf32, #tpu.memory_space<vmem>>, %arg13: memref<128x32xf32, #tpu.memory_space<vmem>>, %arg14: memref<1x32xf32, #tpu.memory_space<vmem>>, %arg15: memref<1x16x32xf32, #tpu.memory_space<vmem>>) attributes {dimension_semantics = [#tpu.dimension_semantics<parallel>], iteration_bounds = array<i64: 2>, scalar_prefetch = 0 : i64, scratch_operands = 0 : i64, tpu.core_type = #tpu.core_type<tc>, window_params = [{transform_indices = @transform_0, window_bounds = array<i64: 1, 16, 32>}, {transform_indices = @transform_1, window_bounds = array<i64: 1, 1, 16>}, {pipeline_mode = #tpu.pipeline_mode<synchronous>, transform_indices = @transform_2, window_bounds = array<i64: 1, 32>}, {pipeline_mode = #tpu.pipeline_mode<synchronous>, transform_indices = @transform_3, window_bounds = array<i64: 1, 32>}, {pipeline_mode = #tpu.pipeline_mode<synchronous>, transform_indices = @transform_4, window_bounds = array<i64: 32, 96>}, {pipeline_mode = #tpu.pipeline_mode<synchronous>, transform_indices = @transform_5, window_bounds = array<i64: 1, 96>}, {pipeline_mode = #tpu.pipeline_mode<synchronous>, transform_indices = @transform_6, window_bounds = array<i64: 32, 32>}, {pipeline_mode = #tpu.pipeline_mode<synchronous>, transform_indices = @transform_7, window_bounds = array<i64: 1, 32>}, {pipeline_mode = #tpu.pipeline_mode<synchronous>, transform_indices = @transform_8, window_bounds = array<i64: 1, 32>}, {pipeline_mode = #tpu.pipeline_mode<synchronous>, transform_indices = @transform_9, window_bounds = array<i64: 1, 32>}, {pipeline_mode = #tpu.pipeline_mode<synchronous>, transform_indices = @transform_10, window_bounds = array<i64: 32, 128>}, {pipeline_mode = #tpu.pipeline_mode<synchronous>, transform_indices = @transform_11, window_bounds = array<i64: 1, 128>}, {pipeline_mode = #tpu.pipeline_mode<synchronous>, transform_indices = @transform_12, window_bounds = array<i64: 128, 32>}, {pipeline_mode = #tpu.pipeline_mode<synchronous>, transform_indices = @transform_13, window_bounds = array<i64: 1, 32>}, {transform_indices = @transform_14, window_bounds = array<i64: 1, 16, 32>}]} {
    %c0 = arith.constant 0 : index
    %c0_0 = arith.constant 0 : index
    %c0_1 = arith.constant 0 : index
    %0 = vector.load %arg1[%c0, %c0_0, %c0_1] : memref<1x16x32xf32, #tpu.memory_space<vmem>>, vector<1x16x32xf32>
    %1 = vector.shape_cast %0 : vector<1x16x32xf32> to vector<16x32xf32>
    %c0_2 = arith.constant 0 : index
    %c0_3 = arith.constant 0 : index
    %2 = vector.load %arg3[%c0_2, %c0_3] : memref<1x32xf32, #tpu.memory_space<vmem>>, vector<1x32xf32>
    %c0_4 = arith.constant 0 : index
    %c0_5 = arith.constant 0 : index
    %3 = vector.load %arg4[%c0_4, %c0_5] : memref<1x32xf32, #tpu.memory_space<vmem>>, vector<1x32xf32>
    %cst = arith.constant dense<0.000000e+00> : vector<16xf32>
    %4 = vector.multi_reduction <add>, %1, %cst [1] : vector<16x32xf32> to vector<16xf32>
    %5 = vector.shape_cast %4 : vector<16xf32> to vector<16x1xf32>
    %cst_6 = arith.constant 3.200000e+01 : f32
    %6 = vector.broadcast %cst_6 : f32 to vector<16x1xf32>
    %7 = arith.divf %5, %6 : vector<16x1xf32>
    %8 = vector.broadcast %7 : vector<16x1xf32> to vector<16x32xf32>
    %9 = arith.subf %1, %8 : vector<16x32xf32>
    %10 = arith.mulf %9, %9 : vector<16x32xf32>
    %cst_7 = arith.constant dense<0.000000e+00> : vector<16xf32>
    %11 = vector.multi_reduction <add>, %10, %cst_7 [1] : vector<16x32xf32> to vector<16xf32>
    %12 = vector.shape_cast %11 : vector<16xf32> to vector<16x1xf32>
    %cst_8 = arith.constant 3.200000e+01 : f32
    %13 = vector.broadcast %cst_8 : f32 to vector<16x1xf32>
    %14 = arith.divf %12, %13 : vector<16x1xf32>
    %15 = vector.broadcast %7 : vector<16x1xf32> to vector<16x32xf32>
    %16 = arith.subf %1, %15 : vector<16x32xf32>
    %cst_9 = arith.constant 9.99999974E-6 : f32
    %17 = vector.broadcast %cst_9 : f32 to vector<16x1xf32>
    %18 = arith.addf %14, %17 : vector<16x1xf32>
    %19 = math.rsqrt %18 : vector<16x1xf32>
    %20 = vector.broadcast %19 : vector<16x1xf32> to vector<16x32xf32>
    %21 = arith.mulf %16, %20 : vector<16x32xf32>
    %22 = vector.broadcast %2 : vector<1x32xf32> to vector<16x32xf32>
    %23 = arith.mulf %21, %22 : vector<16x32xf32>
    %24 = vector.broadcast %3 : vector<1x32xf32> to vector<16x32xf32>
    %25 = arith.addf %23, %24 : vector<16x32xf32>
    %c0_10 = arith.constant 0 : index
    %c0_11 = arith.constant 0 : index
    %26 = vector.load %arg5[%c0_10, %c0_11] : memref<32x96xf32, #tpu.memory_space<vmem>>, vector<32x96xf32>
    %cst_12 = arith.constant dense<0.000000e+00> : vector<16x96xf32>
    %27 = tpu.matmul %25, %26, %cst_12 {dimension_numbers = #tpu.dot_dimension_numbers<[1], [0], [0], [1], [0, 0, 1, 1], [], []>} : vector<16x32xf32>, vector<32x96xf32>, vector<16x96xf32> -> vector<16x96xf32>
    %c0_13 = arith.constant 0 : index
    %c0_14 = arith.constant 0 : index
    %28 = vector.load %arg6[%c0_13, %c0_14] : memref<1x96xf32, #tpu.memory_space<vmem>>, vector<1x96xf32>
    %29 = vector.broadcast %28 : vector<1x96xf32> to vector<16x96xf32>
    %30 = arith.addf %27, %29 : vector<16x96xf32>
    %31 = vector.extract_strided_slice %30 {offsets = [0, 0], sizes = [16, 32], strides = [1, 1]} : vector<16x96xf32> to vector<16x32xf32>
    %32 = vector.extract_strided_slice %30 {offsets = [0, 32], sizes = [16, 32], strides = [1, 1]} : vector<16x96xf32> to vector<16x32xf32>
    %33 = vector.extract_strided_slice %30 {offsets = [0, 64], sizes = [16, 32], strides = [1, 1]} : vector<16x96xf32> to vector<16x32xf32>
    %34 = tpu.iota {dimensions = array<i32: 0>} : vector<16x16xi32>
    %35 = tpu.iota {dimensions = array<i32: 1>} : vector<16x16xi32>
    %36 = arith.cmpi sle, %35, %34 : vector<16x16xi32>
    %c0_15 = arith.constant 0 : index
    %c0_16 = arith.constant 0 : index
    %c0_17 = arith.constant 0 : index
    %37 = vector.load %arg2[%c0_15, %c0_16, %c0_17] : memref<1x1x16xf32, #tpu.memory_space<vmem>>, vector<1x1x16xf32>
    %38 = vector.shape_cast %37 : vector<1x1x16xf32> to vector<1x16xf32>
    %39 = vector.extract_strided_slice %31 {offsets = [0, 0], sizes = [16, 8], strides = [1, 1]} : vector<16x32xf32> to vector<16x8xf32>
    %40 = vector.extract_strided_slice %32 {offsets = [0, 0], sizes = [16, 8], strides = [1, 1]} : vector<16x32xf32> to vector<16x8xf32>
    %41 = vector.extract_strided_slice %33 {offsets = [0, 0], sizes = [16, 8], strides = [1, 1]} : vector<16x32xf32> to vector<16x8xf32>
    %42 = tpu.transpose %40, [1, 0] : vector<16x8xf32> -> vector<8x16xf32>
    %cst_18 = arith.constant dense<0.000000e+00> : vector<16x16xf32>
    %43 = tpu.matmul %39, %42, %cst_18 {dimension_numbers = #tpu.dot_dimension_numbers<[1], [0], [0], [1], [0, 0, 1, 1], [], []>} : vector<16x8xf32>, vector<8x16xf32>, vector<16x16xf32> -> vector<16x16xf32>
    %cst_19 = arith.constant 0.353553385 : f32
    %44 = vector.broadcast %cst_19 : f32 to vector<16x16xf32>
    %45 = arith.mulf %43, %44 : vector<16x16xf32>
    %cst_20 = arith.constant -1.000000e+04 : f32
    %46 = vector.broadcast %cst_20 : f32 to vector<16x16xf32>
    %47 = arith.select %36, %45, %46 : vector<16x16xi1>, vector<16x16xf32>
    %48 = vector.broadcast %38 : vector<1x16xf32> to vector<16x16xf32>
    %49 = arith.addf %47, %48 : vector<16x16xf32>
    %cst_21 = arith.constant dense<0xFF800000> : vector<16xf32>
    %50 = vector.multi_reduction <maximumf>, %49, %cst_21 [1] : vector<16x16xf32> to vector<16xf32>
    %51 = vector.shape_cast %50 : vector<16xf32> to vector<16x1xf32>
    %52 = vector.broadcast %51 : vector<16x1xf32> to vector<16x16xf32>
    %53 = arith.subf %49, %52 : vector<16x16xf32>
    %54 = math.exp %53 : vector<16x16xf32>
    %cst_22 = arith.constant dense<0.000000e+00> : vector<16xf32>
    %55 = vector.multi_reduction <add>, %54, %cst_22 [1] : vector<16x16xf32> to vector<16xf32>
    %56 = vector.shape_cast %55 : vector<16xf32> to vector<16x1xf32>
    %57 = tpu.reciprocal %56 {approx = true} : vector<16x1xf32> -> vector<16x1xf32>
    %58 = vector.broadcast %57 : vector<16x1xf32> to vector<16x16xf32>
    %59 = arith.mulf %54, %58 : vector<16x16xf32>
    %cst_23 = arith.constant dense<0.000000e+00> : vector<16x8xf32>
    %60 = tpu.matmul %59, %41, %cst_23 {dimension_numbers = #tpu.dot_dimension_numbers<[1], [0], [0], [1], [0, 0, 1, 1], [], []>} : vector<16x16xf32>, vector<16x8xf32>, vector<16x8xf32> -> vector<16x8xf32>
    %61 = vector.extract_strided_slice %31 {offsets = [0, 8], sizes = [16, 8], strides = [1, 1]} : vector<16x32xf32> to vector<16x8xf32>
    %62 = vector.extract_strided_slice %32 {offsets = [0, 8], sizes = [16, 8], strides = [1, 1]} : vector<16x32xf32> to vector<16x8xf32>
    %63 = vector.extract_strided_slice %33 {offsets = [0, 8], sizes = [16, 8], strides = [1, 1]} : vector<16x32xf32> to vector<16x8xf32>
    %64 = tpu.transpose %62, [1, 0] : vector<16x8xf32> -> vector<8x16xf32>
    %cst_24 = arith.constant dense<0.000000e+00> : vector<16x16xf32>
    %65 = tpu.matmul %61, %64, %cst_24 {dimension_numbers = #tpu.dot_dimension_numbers<[1], [0], [0], [1], [0, 0, 1, 1], [], []>} : vector<16x8xf32>, vector<8x16xf32>, vector<16x16xf32> -> vector<16x16xf32>
    %cst_25 = arith.constant 0.353553385 : f32
    %66 = vector.broadcast %cst_25 : f32 to vector<16x16xf32>
    %67 = arith.mulf %65, %66 : vector<16x16xf32>
    %cst_26 = arith.constant -1.000000e+04 : f32
    %68 = vector.broadcast %cst_26 : f32 to vector<16x16xf32>
    %69 = arith.select %36, %67, %68 : vector<16x16xi1>, vector<16x16xf32>
    %70 = vector.broadcast %38 : vector<1x16xf32> to vector<16x16xf32>
    %71 = arith.addf %69, %70 : vector<16x16xf32>
    %cst_27 = arith.constant dense<0xFF800000> : vector<16xf32>
    %72 = vector.multi_reduction <maximumf>, %71, %cst_27 [1] : vector<16x16xf32> to vector<16xf32>
    %73 = vector.shape_cast %72 : vector<16xf32> to vector<16x1xf32>
    %74 = vector.broadcast %73 : vector<16x1xf32> to vector<16x16xf32>
    %75 = arith.subf %71, %74 : vector<16x16xf32>
    %76 = math.exp %75 : vector<16x16xf32>
    %cst_28 = arith.constant dense<0.000000e+00> : vector<16xf32>
    %77 = vector.multi_reduction <add>, %76, %cst_28 [1] : vector<16x16xf32> to vector<16xf32>
    %78 = vector.shape_cast %77 : vector<16xf32> to vector<16x1xf32>
    %79 = tpu.reciprocal %78 {approx = true} : vector<16x1xf32> -> vector<16x1xf32>
    %80 = vector.broadcast %79 : vector<16x1xf32> to vector<16x16xf32>
    %81 = arith.mulf %76, %80 : vector<16x16xf32>
    %cst_29 = arith.constant dense<0.000000e+00> : vector<16x8xf32>
    %82 = tpu.matmul %81, %63, %cst_29 {dimension_numbers = #tpu.dot_dimension_numbers<[1], [0], [0], [1], [0, 0, 1, 1], [], []>} : vector<16x16xf32>, vector<16x8xf32>, vector<16x8xf32> -> vector<16x8xf32>
    %83 = vector.extract_strided_slice %31 {offsets = [0, 16], sizes = [16, 8], strides = [1, 1]} : vector<16x32xf32> to vector<16x8xf32>
    %84 = vector.extract_strided_slice %32 {offsets = [0, 16], sizes = [16, 8], strides = [1, 1]} : vector<16x32xf32> to vector<16x8xf32>
    %85 = vector.extract_strided_slice %33 {offsets = [0, 16], sizes = [16, 8], strides = [1, 1]} : vector<16x32xf32> to vector<16x8xf32>
    %86 = tpu.transpose %84, [1, 0] : vector<16x8xf32> -> vector<8x16xf32>
    %cst_30 = arith.constant dense<0.000000e+00> : vector<16x16xf32>
    %87 = tpu.matmul %83, %86, %cst_30 {dimension_numbers = #tpu.dot_dimension_numbers<[1], [0], [0], [1], [0, 0, 1, 1], [], []>} : vector<16x8xf32>, vector<8x16xf32>, vector<16x16xf32> -> vector<16x16xf32>
    %cst_31 = arith.constant 0.353553385 : f32
    %88 = vector.broadcast %cst_31 : f32 to vector<16x16xf32>
    %89 = arith.mulf %87, %88 : vector<16x16xf32>
    %cst_32 = arith.constant -1.000000e+04 : f32
    %90 = vector.broadcast %cst_32 : f32 to vector<16x16xf32>
    %91 = arith.select %36, %89, %90 : vector<16x16xi1>, vector<16x16xf32>
    %92 = vector.broadcast %38 : vector<1x16xf32> to vector<16x16xf32>
    %93 = arith.addf %91, %92 : vector<16x16xf32>
    %cst_33 = arith.constant dense<0xFF800000> : vector<16xf32>
    %94 = vector.multi_reduction <maximumf>, %93, %cst_33 [1] : vector<16x16xf32> to vector<16xf32>
    %95 = vector.shape_cast %94 : vector<16xf32> to vector<16x1xf32>
    %96 = vector.broadcast %95 : vector<16x1xf32> to vector<16x16xf32>
    %97 = arith.subf %93, %96 : vector<16x16xf32>
    %98 = math.exp %97 : vector<16x16xf32>
    %cst_34 = arith.constant dense<0.000000e+00> : vector<16xf32>
    %99 = vector.multi_reduction <add>, %98, %cst_34 [1] : vector<16x16xf32> to vector<16xf32>
    %100 = vector.shape_cast %99 : vector<16xf32> to vector<16x1xf32>
    %101 = tpu.reciprocal %100 {approx = true} : vector<16x1xf32> -> vector<16x1xf32>
    %102 = vector.broadcast %101 : vector<16x1xf32> to vector<16x16xf32>
    %103 = arith.mulf %98, %102 : vector<16x16xf32>
    %cst_35 = arith.constant dense<0.000000e+00> : vector<16x8xf32>
    %104 = tpu.matmul %103, %85, %cst_35 {dimension_numbers = #tpu.dot_dimension_numbers<[1], [0], [0], [1], [0, 0, 1, 1], [], []>} : vector<16x16xf32>, vector<16x8xf32>, vector<16x8xf32> -> vector<16x8xf32>
    %105 = vector.extract_strided_slice %31 {offsets = [0, 24], sizes = [16, 8], strides = [1, 1]} : vector<16x32xf32> to vector<16x8xf32>
    %106 = vector.extract_strided_slice %32 {offsets = [0, 24], sizes = [16, 8], strides = [1, 1]} : vector<16x32xf32> to vector<16x8xf32>
    %107 = vector.extract_strided_slice %33 {offsets = [0, 24], sizes = [16, 8], strides = [1, 1]} : vector<16x32xf32> to vector<16x8xf32>
    %108 = tpu.transpose %106, [1, 0] : vector<16x8xf32> -> vector<8x16xf32>
    %cst_36 = arith.constant dense<0.000000e+00> : vector<16x16xf32>
    %109 = tpu.matmul %105, %108, %cst_36 {dimension_numbers = #tpu.dot_dimension_numbers<[1], [0], [0], [1], [0, 0, 1, 1], [], []>} : vector<16x8xf32>, vector<8x16xf32>, vector<16x16xf32> -> vector<16x16xf32>
    %cst_37 = arith.constant 0.353553385 : f32
    %110 = vector.broadcast %cst_37 : f32 to vector<16x16xf32>
    %111 = arith.mulf %109, %110 : vector<16x16xf32>
    %cst_38 = arith.constant -1.000000e+04 : f32
    %112 = vector.broadcast %cst_38 : f32 to vector<16x16xf32>
    %113 = arith.select %36, %111, %112 : vector<16x16xi1>, vector<16x16xf32>
    %114 = vector.broadcast %38 : vector<1x16xf32> to vector<16x16xf32>
    %115 = arith.addf %113, %114 : vector<16x16xf32>
    %cst_39 = arith.constant dense<0xFF800000> : vector<16xf32>
    %116 = vector.multi_reduction <maximumf>, %115, %cst_39 [1] : vector<16x16xf32> to vector<16xf32>
    %117 = vector.shape_cast %116 : vector<16xf32> to vector<16x1xf32>
    %118 = vector.broadcast %117 : vector<16x1xf32> to vector<16x16xf32>
    %119 = arith.subf %115, %118 : vector<16x16xf32>
    %120 = math.exp %119 : vector<16x16xf32>
    %cst_40 = arith.constant dense<0.000000e+00> : vector<16xf32>
    %121 = vector.multi_reduction <add>, %120, %cst_40 [1] : vector<16x16xf32> to vector<16xf32>
    %122 = vector.shape_cast %121 : vector<16xf32> to vector<16x1xf32>
    %123 = tpu.reciprocal %122 {approx = true} : vector<16x1xf32> -> vector<16x1xf32>
    %124 = vector.broadcast %123 : vector<16x1xf32> to vector<16x16xf32>
    %125 = arith.mulf %120, %124 : vector<16x16xf32>
    %cst_41 = arith.constant dense<0.000000e+00> : vector<16x8xf32>
    %126 = tpu.matmul %125, %107, %cst_41 {dimension_numbers = #tpu.dot_dimension_numbers<[1], [0], [0], [1], [0, 0, 1, 1], [], []>} : vector<16x16xf32>, vector<16x8xf32>, vector<16x8xf32> -> vector<16x8xf32>
    %127 = tpu.concatenate %60, %82, %104, %126 in 1 : vector<16x8xf32>, vector<16x8xf32>, vector<16x8xf32>, vector<16x8xf32> -> vector<16x32xf32>
    %c0_42 = arith.constant 0 : index
    %c0_43 = arith.constant 0 : index
    %128 = vector.load %arg7[%c0_42, %c0_43] : memref<32x32xf32, #tpu.memory_space<vmem>>, vector<32x32xf32>
    %cst_44 = arith.constant dense<0.000000e+00> : vector<16x32xf32>
    %129 = tpu.matmul %127, %128, %cst_44 {dimension_numbers = #tpu.dot_dimension_numbers<[1], [0], [0], [1], [0, 0, 1, 1], [], []>} : vector<16x32xf32>, vector<32x32xf32>, vector<16x32xf32> -> vector<16x32xf32>
    %c0_45 = arith.constant 0 : index
    %c0_46 = arith.constant 0 : index
    %130 = vector.load %arg8[%c0_45, %c0_46] : memref<1x32xf32, #tpu.memory_space<vmem>>, vector<1x32xf32>
    %131 = vector.broadcast %130 : vector<1x32xf32> to vector<16x32xf32>
    %132 = arith.addf %129, %131 : vector<16x32xf32>
    %133 = arith.addf %1, %132 : vector<16x32xf32>
    %c0_47 = arith.constant 0 : index
    %c0_48 = arith.constant 0 : index
    %134 = vector.load %arg9[%c0_47, %c0_48] : memref<1x32xf32, #tpu.memory_space<vmem>>, vector<1x32xf32>
    %c0_49 = arith.constant 0 : index
    %c0_50 = arith.constant 0 : index
    %135 = vector.load %arg10[%c0_49, %c0_50] : memref<1x32xf32, #tpu.memory_space<vmem>>, vector<1x32xf32>
    %cst_51 = arith.constant dense<0.000000e+00> : vector<16xf32>
    %136 = vector.multi_reduction <add>, %133, %cst_51 [1] : vector<16x32xf32> to vector<16xf32>
    %137 = vector.shape_cast %136 : vector<16xf32> to vector<16x1xf32>
    %cst_52 = arith.constant 3.200000e+01 : f32
    %138 = vector.broadcast %cst_52 : f32 to vector<16x1xf32>
    %139 = arith.divf %137, %138 : vector<16x1xf32>
    %140 = vector.broadcast %139 : vector<16x1xf32> to vector<16x32xf32>
    %141 = arith.subf %133, %140 : vector<16x32xf32>
    %142 = arith.mulf %141, %141 : vector<16x32xf32>
    %cst_53 = arith.constant dense<0.000000e+00> : vector<16xf32>
    %143 = vector.multi_reduction <add>, %142, %cst_53 [1] : vector<16x32xf32> to vector<16xf32>
    %144 = vector.shape_cast %143 : vector<16xf32> to vector<16x1xf32>
    %cst_54 = arith.constant 3.200000e+01 : f32
    %145 = vector.broadcast %cst_54 : f32 to vector<16x1xf32>
    %146 = arith.divf %144, %145 : vector<16x1xf32>
    %147 = vector.broadcast %139 : vector<16x1xf32> to vector<16x32xf32>
    %148 = arith.subf %133, %147 : vector<16x32xf32>
    %cst_55 = arith.constant 9.99999974E-6 : f32
    %149 = vector.broadcast %cst_55 : f32 to vector<16x1xf32>
    %150 = arith.addf %146, %149 : vector<16x1xf32>
    %151 = math.rsqrt %150 : vector<16x1xf32>
    %152 = vector.broadcast %151 : vector<16x1xf32> to vector<16x32xf32>
    %153 = arith.mulf %148, %152 : vector<16x32xf32>
    %154 = vector.broadcast %134 : vector<1x32xf32> to vector<16x32xf32>
    %155 = arith.mulf %153, %154 : vector<16x32xf32>
    %156 = vector.broadcast %135 : vector<1x32xf32> to vector<16x32xf32>
    %157 = arith.addf %155, %156 : vector<16x32xf32>
    %c0_56 = arith.constant 0 : index
    %c0_57 = arith.constant 0 : index
    %158 = vector.load %arg11[%c0_56, %c0_57] : memref<32x128xf32, #tpu.memory_space<vmem>>, vector<32x128xf32>
    %cst_58 = arith.constant dense<0.000000e+00> : vector<16x128xf32>
    %159 = tpu.matmul %157, %158, %cst_58 {dimension_numbers = #tpu.dot_dimension_numbers<[1], [0], [0], [1], [0, 0, 1, 1], [], []>} : vector<16x32xf32>, vector<32x128xf32>, vector<16x128xf32> -> vector<16x128xf32>
    %c0_59 = arith.constant 0 : index
    %c0_60 = arith.constant 0 : index
    %160 = vector.load %arg12[%c0_59, %c0_60] : memref<1x128xf32, #tpu.memory_space<vmem>>, vector<1x128xf32>
    %161 = vector.broadcast %160 : vector<1x128xf32> to vector<16x128xf32>
    %162 = arith.addf %159, %161 : vector<16x128xf32>
    %cst_61 = arith.constant 5.000000e-01 : f32
    %163 = vector.broadcast %cst_61 : f32 to vector<16x128xf32>
    %164 = arith.mulf %163, %162 : vector<16x128xf32>
    %165 = arith.mulf %162, %162 : vector<16x128xf32>
    %166 = arith.mulf %162, %165 : vector<16x128xf32>
    %cst_62 = arith.constant 4.471500e-02 : f32
    %167 = vector.broadcast %cst_62 : f32 to vector<16x128xf32>
    %168 = arith.mulf %167, %166 : vector<16x128xf32>
    %169 = arith.addf %162, %168 : vector<16x128xf32>
    %cst_63 = arith.constant 0.797884583 : f32
    %170 = vector.broadcast %cst_63 : f32 to vector<16x128xf32>
    %171 = arith.mulf %170, %169 : vector<16x128xf32>
    %172 = math.tanh %171 : vector<16x128xf32>
    %cst_64 = arith.constant 1.000000e+00 : f32
    %173 = vector.broadcast %cst_64 : f32 to vector<16x128xf32>
    %174 = arith.addf %173, %172 : vector<16x128xf32>
    %175 = arith.mulf %164, %174 : vector<16x128xf32>
    %c0_65 = arith.constant 0 : index
    %c0_66 = arith.constant 0 : index
    %176 = vector.load %arg13[%c0_65, %c0_66] : memref<128x32xf32, #tpu.memory_space<vmem>>, vector<128x32xf32>
    %cst_67 = arith.constant dense<0.000000e+00> : vector<16x32xf32>
    %177 = tpu.matmul %175, %176, %cst_67 {dimension_numbers = #tpu.dot_dimension_numbers<[1], [0], [0], [1], [0, 0, 1, 1], [], []>} : vector<16x128xf32>, vector<128x32xf32>, vector<16x32xf32> -> vector<16x32xf32>
    %c0_68 = arith.constant 0 : index
    %c0_69 = arith.constant 0 : index
    %178 = vector.load %arg14[%c0_68, %c0_69] : memref<1x32xf32, #tpu.memory_space<vmem>>, vector<1x32xf32>
    %179 = vector.broadcast %178 : vector<1x32xf32> to vector<16x32xf32>
    %180 = arith.addf %177, %179 : vector<16x32xf32>
    %181 = arith.addf %133, %180 : vector<16x32xf32>
    %c0_70 = arith.constant 0 : index
    %c0_71 = arith.constant 0 : index
    %c0_72 = arith.constant 0 : index
    %182 = vector.load %arg15[%c0_70, %c0_71, %c0_72] : memref<1x16x32xf32, #tpu.memory_space<vmem>>, vector<1x16x32xf32>
    %183 = vector.shape_cast %182 : vector<1x16x32xf32> to vector<16x32xf32>
    %184 = vector.shape_cast %181 : vector<16x32xf32> to vector<1x16x32xf32>
    tpu.vector_store %arg15[%c0_70, %c0_71, %c0_72], %184 {strides = array<i32>} : memref<1x16x32xf32, #tpu.memory_space<vmem>>, vector<1x16x32xf32>,
    return
  }
  func.func @transform_0(%arg0: i32) -> (i32, i32, i32) {
    %c0_i32 = arith.constant 0 : i32
    %c0_i32_0 = arith.constant 0 : i32
    %c0_i32_1 = arith.constant 0 : i32
    return %arg0, %c0_i32, %c0_i32_0 : i32, i32, i32
  }
  func.func @transform_1(%arg0: i32) -> (i32, i32, i32) {
    %c0_i32 = arith.constant 0 : i32
    %c0_i32_0 = arith.constant 0 : i32
    %c0_i32_1 = arith.constant 0 : i32
    return %arg0, %c0_i32, %c0_i32_0 : i32, i32, i32
  }
  func.func @transform_2(%arg0: i32) -> (i32, i32) {
    %c0_i32 = arith.constant 0 : i32
    %c0_i32_0 = arith.constant 0 : i32
    %c0_i32_1 = arith.constant 0 : i32
    return %c0_i32, %c0_i32_0 : i32, i32
  }
  func.func @transform_3(%arg0: i32) -> (i32, i32) {
    %c0_i32 = arith.constant 0 : i32
    %c0_i32_0 = arith.constant 0 : i32
    %c0_i32_1 = arith.constant 0 : i32
    return %c0_i32, %c0_i32_0 : i32, i32
  }
  func.func @transform_4(%arg0: i32) -> (i32, i32) {
    %c0_i32 = arith.constant 0 : i32
    %c0_i32_0 = arith.constant 0 : i32
    %c0_i32_1 = arith.constant 0 : i32
    return %c0_i32, %c0_i32_0 : i32, i32
  }
  func.func @transform_5(%arg0: i32) -> (i32, i32) {
    %c0_i32 = arith.constant 0 : i32
    %c0_i32_0 = arith.constant 0 : i32
    %c0_i32_1 = arith.constant 0 : i32
    return %c0_i32, %c0_i32_0 : i32, i32
  }
  func.func @transform_6(%arg0: i32) -> (i32, i32) {
    %c0_i32 = arith.constant 0 : i32
    %c0_i32_0 = arith.constant 0 : i32
    %c0_i32_1 = arith.constant 0 : i32
    return %c0_i32, %c0_i32_0 : i32, i32
  }
  func.func @transform_7(%arg0: i32) -> (i32, i32) {
    %c0_i32 = arith.constant 0 : i32
    %c0_i32_0 = arith.constant 0 : i32
    %c0_i32_1 = arith.constant 0 : i32
    return %c0_i32, %c0_i32_0 : i32, i32
  }
  func.func @transform_8(%arg0: i32) -> (i32, i32) {
    %c0_i32 = arith.constant 0 : i32
    %c0_i32_0 = arith.constant 0 : i32
    %c0_i32_1 = arith.constant 0 : i32
    return %c0_i32, %c0_i32_0 : i32, i32
  }
  func.func @transform_9(%arg0: i32) -> (i32, i32) {
    %c0_i32 = arith.constant 0 : i32
    %c0_i32_0 = arith.constant 0 : i32
    %c0_i32_1 = arith.constant 0 : i32
    return %c0_i32, %c0_i32_0 : i32, i32
  }
  func.func @transform_10(%arg0: i32) -> (i32, i32) {
    %c0_i32 = arith.constant 0 : i32
    %c0_i32_0 = arith.constant 0 : i32
    %c0_i32_1 = arith.constant 0 : i32
    return %c0_i32, %c0_i32_0 : i32, i32
  }
  func.func @transform_11(%arg0: i32) -> (i32, i32) {
    %c0_i32 = arith.constant 0 : i32
    %c0_i32_0 = arith.constant 0 : i32
    %c0_i32_1 = arith.constant 0 : i32
    return %c0_i32, %c0_i32_0 : i32, i32
  }
  func.func @transform_12(%arg0: i32) -> (i32, i32) {
    %c0_i32 = arith.constant 0 : i32
    %c0_i32_0 = arith.constant 0 : i32
    %c0_i32_1 = arith.constant 0 : i32
    return %c0_i32, %c0_i32_0 : i32, i32
  }
  func.func @transform_13(%arg0: i32) -> (i32, i32) {
    %c0_i32 = arith.constant 0 : i32
    %c0_i32_0 = arith.constant 0 : i32
    %c0_i32_1 = arith.constant 0 : i32
    return %c0_i32, %c0_i32_0 : i32, i32
  }
  func.func @transform_14(%arg0: i32) -> (i32, i32, i32) {
    %c0_i32 = arith.constant 0 : i32
    %c0_i32_0 = arith.constant 0 : i32
    %c0_i32_1 = arith.constant 0 : i32
    return %arg0, %c0_i32, %c0_i32_0 : i32, i32, i32
  }
}

module attributes {stable_mosaic.version = 11 : i64} {
  func.func @_layernorm_kernel(%arg0: memref<8x32xf32, #tpu.memory_space<vmem>>, %arg1: memref<1x32xf32, #tpu.memory_space<vmem>>, %arg2: memref<1x32xf32, #tpu.memory_space<vmem>>, %arg3: memref<8x32xf32, #tpu.memory_space<vmem>>) attributes {dimension_semantics = [], scalar_prefetch = 0 : i64, scratch_operands = 0 : i64, tpu.core_type = #tpu.core_type<tc>} {
    %c0 = arith.constant 0 : index
    %c0_0 = arith.constant 0 : index
    %0 = vector.load %arg0[%c0, %c0_0] : memref<8x32xf32, #tpu.memory_space<vmem>>, vector<8x32xf32>
    %c0_1 = arith.constant 0 : index
    %c0_2 = arith.constant 0 : index
    %1 = vector.load %arg1[%c0_1, %c0_2] : memref<1x32xf32, #tpu.memory_space<vmem>>, vector<1x32xf32>
    %c0_3 = arith.constant 0 : index
    %c0_4 = arith.constant 0 : index
    %2 = vector.load %arg2[%c0_3, %c0_4] : memref<1x32xf32, #tpu.memory_space<vmem>>, vector<1x32xf32>
    %cst = arith.constant dense<0.000000e+00> : vector<8xf32>
    %3 = vector.multi_reduction <add>, %0, %cst [1] : vector<8x32xf32> to vector<8xf32>
    %4 = vector.shape_cast %3 : vector<8xf32> to vector<8x1xf32>
    %cst_5 = arith.constant 3.200000e+01 : f32
    %5 = vector.broadcast %cst_5 : f32 to vector<8x1xf32>
    %6 = arith.divf %4, %5 : vector<8x1xf32>
    %7 = vector.broadcast %6 : vector<8x1xf32> to vector<8x32xf32>
    %8 = arith.subf %0, %7 : vector<8x32xf32>
    %9 = arith.mulf %8, %8 : vector<8x32xf32>
    %cst_6 = arith.constant dense<0.000000e+00> : vector<8xf32>
    %10 = vector.multi_reduction <add>, %9, %cst_6 [1] : vector<8x32xf32> to vector<8xf32>
    %11 = vector.shape_cast %10 : vector<8xf32> to vector<8x1xf32>
    %cst_7 = arith.constant 3.200000e+01 : f32
    %12 = vector.broadcast %cst_7 : f32 to vector<8x1xf32>
    %13 = arith.divf %11, %12 : vector<8x1xf32>
    %14 = vector.broadcast %6 : vector<8x1xf32> to vector<8x32xf32>
    %15 = arith.subf %0, %14 : vector<8x32xf32>
    %cst_8 = arith.constant 9.99999974E-6 : f32
    %16 = vector.broadcast %cst_8 : f32 to vector<8x1xf32>
    %17 = arith.addf %13, %16 : vector<8x1xf32>
    %18 = math.rsqrt %17 : vector<8x1xf32>
    %19 = vector.broadcast %18 : vector<8x1xf32> to vector<8x32xf32>
    %20 = arith.mulf %15, %19 : vector<8x32xf32>
    %21 = vector.broadcast %1 : vector<1x32xf32> to vector<8x32xf32>
    %22 = arith.mulf %20, %21 : vector<8x32xf32>
    %23 = vector.broadcast %2 : vector<1x32xf32> to vector<8x32xf32>
    %24 = arith.addf %22, %23 : vector<8x32xf32>
    %c0_9 = arith.constant 0 : index
    %c0_10 = arith.constant 0 : index
    %25 = vector.load %arg3[%c0_9, %c0_10] : memref<8x32xf32, #tpu.memory_space<vmem>>, vector<8x32xf32>
    tpu.vector_store %arg3[%c0_9, %c0_10], %24 {strides = array<i32>} : memref<8x32xf32, #tpu.memory_space<vmem>>, vector<8x32xf32>,
    return
  }
}

module attributes {stable_mosaic.version = 11 : i64} {
  func.func @_block_kernel(%arg0: i32, %arg1: memref<1x4x32xf32, #tpu.memory_space<vmem>>, %arg2: memref<1x1x4xf32, #tpu.memory_space<vmem>>, %arg3: memref<1x32xf32, #tpu.memory_space<vmem>>, %arg4: memref<1x32xf32, #tpu.memory_space<vmem>>, %arg5: memref<32x96xf32, #tpu.memory_space<vmem>>, %arg6: memref<1x96xf32, #tpu.memory_space<vmem>>, %arg7: memref<32x32xf32, #tpu.memory_space<vmem>>, %arg8: memref<1x32xf32, #tpu.memory_space<vmem>>, %arg9: memref<1x32xf32, #tpu.memory_space<vmem>>, %arg10: memref<1x32xf32, #tpu.memory_space<vmem>>, %arg11: memref<32x128xf32, #tpu.memory_space<vmem>>, %arg12: memref<1x128xf32, #tpu.memory_space<vmem>>, %arg13: memref<128x32xf32, #tpu.memory_space<vmem>>, %arg14: memref<1x32xf32, #tpu.memory_space<vmem>>, %arg15: memref<1x4x32xf32, #tpu.memory_space<vmem>>) attributes {dimension_semantics = [#tpu.dimension_semantics<parallel>], iteration_bounds = array<i64: 2>, scalar_prefetch = 0 : i64, scratch_operands = 0 : i64, tpu.core_type = #tpu.core_type<tc>, window_params = [{transform_indices = @transform_0, window_bounds = array<i64: 1, 4, 32>}, {transform_indices = @transform_1, window_bounds = array<i64: 1, 1, 4>}, {pipeline_mode = #tpu.pipeline_mode<synchronous>, transform_indices = @transform_2, window_bounds = array<i64: 1, 32>}, {pipeline_mode = #tpu.pipeline_mode<synchronous>, transform_indices = @transform_3, window_bounds = array<i64: 1, 32>}, {pipeline_mode = #tpu.pipeline_mode<synchronous>, transform_indices = @transform_4, window_bounds = array<i64: 32, 96>}, {pipeline_mode = #tpu.pipeline_mode<synchronous>, transform_indices = @transform_5, window_bounds = array<i64: 1, 96>}, {pipeline_mode = #tpu.pipeline_mode<synchronous>, transform_indices = @transform_6, window_bounds = array<i64: 32, 32>}, {pipeline_mode = #tpu.pipeline_mode<synchronous>, transform_indices = @transform_7, window_bounds = array<i64: 1, 32>}, {pipeline_mode = #tpu.pipeline_mode<synchronous>, transform_indices = @transform_8, window_bounds = array<i64: 1, 32>}, {pipeline_mode = #tpu.pipeline_mode<synchronous>, transform_indices = @transform_9, window_bounds = array<i64: 1, 32>}, {pipeline_mode = #tpu.pipeline_mode<synchronous>, transform_indices = @transform_10, window_bounds = array<i64: 32, 128>}, {pipeline_mode = #tpu.pipeline_mode<synchronous>, transform_indices = @transform_11, window_bounds = array<i64: 1, 128>}, {pipeline_mode = #tpu.pipeline_mode<synchronous>, transform_indices = @transform_12, window_bounds = array<i64: 128, 32>}, {pipeline_mode = #tpu.pipeline_mode<synchronous>, transform_indices = @transform_13, window_bounds = array<i64: 1, 32>}, {transform_indices = @transform_14, window_bounds = array<i64: 1, 4, 32>}]} {
    %c0 = arith.constant 0 : index
    %c0_0 = arith.constant 0 : index
    %c0_1 = arith.constant 0 : index
    %0 = vector.load %arg1[%c0, %c0_0, %c0_1] : memref<1x4x32xf32, #tpu.memory_space<vmem>>, vector<1x4x32xf32>
    %1 = vector.shape_cast %0 : vector<1x4x32xf32> to vector<4x32xf32>
    %c0_2 = arith.constant 0 : index
    %c0_3 = arith.constant 0 : index
    %2 = vector.load %arg3[%c0_2, %c0_3] : memref<1x32xf32, #tpu.memory_space<vmem>>, vector<1x32xf32>
    %c0_4 = arith.constant 0 : index
    %c0_5 = arith.constant 0 : index
    %3 = vector.load %arg4[%c0_4, %c0_5] : memref<1x32xf32, #tpu.memory_space<vmem>>, vector<1x32xf32>
    %cst = arith.constant dense<0.000000e+00> : vector<4xf32>
    %4 = vector.multi_reduction <add>, %1, %cst [1] : vector<4x32xf32> to vector<4xf32>
    %5 = vector.shape_cast %4 : vector<4xf32> to vector<4x1xf32>
    %cst_6 = arith.constant 3.200000e+01 : f32
    %6 = vector.broadcast %cst_6 : f32 to vector<4x1xf32>
    %7 = arith.divf %5, %6 : vector<4x1xf32>
    %8 = vector.broadcast %7 : vector<4x1xf32> to vector<4x32xf32>
    %9 = arith.subf %1, %8 : vector<4x32xf32>
    %10 = arith.mulf %9, %9 : vector<4x32xf32>
    %cst_7 = arith.constant dense<0.000000e+00> : vector<4xf32>
    %11 = vector.multi_reduction <add>, %10, %cst_7 [1] : vector<4x32xf32> to vector<4xf32>
    %12 = vector.shape_cast %11 : vector<4xf32> to vector<4x1xf32>
    %cst_8 = arith.constant 3.200000e+01 : f32
    %13 = vector.broadcast %cst_8 : f32 to vector<4x1xf32>
    %14 = arith.divf %12, %13 : vector<4x1xf32>
    %15 = vector.broadcast %7 : vector<4x1xf32> to vector<4x32xf32>
    %16 = arith.subf %1, %15 : vector<4x32xf32>
    %cst_9 = arith.constant 9.99999974E-6 : f32
    %17 = vector.broadcast %cst_9 : f32 to vector<4x1xf32>
    %18 = arith.addf %14, %17 : vector<4x1xf32>
    %19 = math.rsqrt %18 : vector<4x1xf32>
    %20 = vector.broadcast %19 : vector<4x1xf32> to vector<4x32xf32>
    %21 = arith.mulf %16, %20 : vector<4x32xf32>
    %22 = vector.broadcast %2 : vector<1x32xf32> to vector<4x32xf32>
    %23 = arith.mulf %21, %22 : vector<4x32xf32>
    %24 = vector.broadcast %3 : vector<1x32xf32> to vector<4x32xf32>
    %25 = arith.addf %23, %24 : vector<4x32xf32>
    %c0_10 = arith.constant 0 : index
    %c0_11 = arith.constant 0 : index
    %26 = vector.load %arg5[%c0_10, %c0_11] : memref<32x96xf32, #tpu.memory_space<vmem>>, vector<32x96xf32>
    %cst_12 = arith.constant dense<0.000000e+00> : vector<4x96xf32>
    %27 = tpu.matmul %25, %26, %cst_12 {dimension_numbers = #tpu.dot_dimension_numbers<[1], [0], [0], [1], [0, 0, 1, 1], [], []>} : vector<4x32xf32>, vector<32x96xf32>, vector<4x96xf32> -> vector<4x96xf32>
    %c0_13 = arith.constant 0 : index
    %c0_14 = arith.constant 0 : index
    %28 = vector.load %arg6[%c0_13, %c0_14] : memref<1x96xf32, #tpu.memory_space<vmem>>, vector<1x96xf32>
    %29 = vector.broadcast %28 : vector<1x96xf32> to vector<4x96xf32>
    %30 = arith.addf %27, %29 : vector<4x96xf32>
    %31 = vector.extract_strided_slice %30 {offsets = [0, 0], sizes = [4, 32], strides = [1, 1]} : vector<4x96xf32> to vector<4x32xf32>
    %32 = vector.extract_strided_slice %30 {offsets = [0, 32], sizes = [4, 32], strides = [1, 1]} : vector<4x96xf32> to vector<4x32xf32>
    %33 = vector.extract_strided_slice %30 {offsets = [0, 64], sizes = [4, 32], strides = [1, 1]} : vector<4x96xf32> to vector<4x32xf32>
    %34 = tpu.iota {dimensions = array<i32: 0>} : vector<4x4xi32>
    %35 = tpu.iota {dimensions = array<i32: 1>} : vector<4x4xi32>
    %36 = arith.cmpi sle, %35, %34 : vector<4x4xi32>
    %c0_15 = arith.constant 0 : index
    %c0_16 = arith.constant 0 : index
    %c0_17 = arith.constant 0 : index
    %37 = vector.load %arg2[%c0_15, %c0_16, %c0_17] : memref<1x1x4xf32, #tpu.memory_space<vmem>>, vector<1x1x4xf32>
    %38 = vector.shape_cast %37 : vector<1x1x4xf32> to vector<1x4xf32>
    %39 = vector.extract_strided_slice %31 {offsets = [0, 0], sizes = [4, 8], strides = [1, 1]} : vector<4x32xf32> to vector<4x8xf32>
    %40 = vector.extract_strided_slice %32 {offsets = [0, 0], sizes = [4, 8], strides = [1, 1]} : vector<4x32xf32> to vector<4x8xf32>
    %41 = vector.extract_strided_slice %33 {offsets = [0, 0], sizes = [4, 8], strides = [1, 1]} : vector<4x32xf32> to vector<4x8xf32>
    %42 = tpu.transpose %40, [1, 0] : vector<4x8xf32> -> vector<8x4xf32>
    %cst_18 = arith.constant dense<0.000000e+00> : vector<4x4xf32>
    %43 = tpu.matmul %39, %42, %cst_18 {dimension_numbers = #tpu.dot_dimension_numbers<[1], [0], [0], [1], [0, 0, 1, 1], [], []>} : vector<4x8xf32>, vector<8x4xf32>, vector<4x4xf32> -> vector<4x4xf32>
    %cst_19 = arith.constant 0.353553385 : f32
    %44 = vector.broadcast %cst_19 : f32 to vector<4x4xf32>
    %45 = arith.mulf %43, %44 : vector<4x4xf32>
    %cst_20 = arith.constant -1.000000e+04 : f32
    %46 = vector.broadcast %cst_20 : f32 to vector<4x4xf32>
    %47 = arith.select %36, %45, %46 : vector<4x4xi1>, vector<4x4xf32>
    %48 = vector.broadcast %38 : vector<1x4xf32> to vector<4x4xf32>
    %49 = arith.addf %47, %48 : vector<4x4xf32>
    %cst_21 = arith.constant dense<0xFF800000> : vector<4xf32>
    %50 = vector.multi_reduction <maximumf>, %49, %cst_21 [1] : vector<4x4xf32> to vector<4xf32>
    %51 = vector.shape_cast %50 : vector<4xf32> to vector<4x1xf32>
    %52 = vector.broadcast %51 : vector<4x1xf32> to vector<4x4xf32>
    %53 = arith.subf %49, %52 : vector<4x4xf32>
    %54 = math.exp %53 : vector<4x4xf32>
    %cst_22 = arith.constant dense<0.000000e+00> : vector<4xf32>
    %55 = vector.multi_reduction <add>, %54, %cst_22 [1] : vector<4x4xf32> to vector<4xf32>
    %56 = vector.shape_cast %55 : vector<4xf32> to vector<4x1xf32>
    %57 = tpu.reciprocal %56 {approx = true} : vector<4x1xf32> -> vector<4x1xf32>
    %58 = vector.broadcast %57 : vector<4x1xf32> to vector<4x4xf32>
    %59 = arith.mulf %54, %58 : vector<4x4xf32>
    %cst_23 = arith.constant dense<0.000000e+00> : vector<4x8xf32>
    %60 = tpu.matmul %59, %41, %cst_23 {dimension_numbers = #tpu.dot_dimension_numbers<[1], [0], [0], [1], [0, 0, 1, 1], [], []>} : vector<4x4xf32>, vector<4x8xf32>, vector<4x8xf32> -> vector<4x8xf32>
    %61 = vector.extract_strided_slice %31 {offsets = [0, 8], sizes = [4, 8], strides = [1, 1]} : vector<4x32xf32> to vector<4x8xf32>
    %62 = vector.extract_strided_slice %32 {offsets = [0, 8], sizes = [4, 8], strides = [1, 1]} : vector<4x32xf32> to vector<4x8xf32>
    %63 = vector.extract_strided_slice %33 {offsets = [0, 8], sizes = [4, 8], strides = [1, 1]} : vector<4x32xf32> to vector<4x8xf32>
    %64 = tpu.transpose %62, [1, 0] : vector<4x8xf32> -> vector<8x4xf32>
    %cst_24 = arith.constant dense<0.000000e+00> : vector<4x4xf32>
    %65 = tpu.matmul %61, %64, %cst_24 {dimension_numbers = #tpu.dot_dimension_numbers<[1], [0], [0], [1], [0, 0, 1, 1], [], []>} : vector<4x8xf32>, vector<8x4xf32>, vector<4x4xf32> -> vector<4x4xf32>
    %cst_25 = arith.constant 0.353553385 : f32
    %66 = vector.broadcast %cst_25 : f32 to vector<4x4xf32>
    %67 = arith.mulf %65, %66 : vector<4x4xf32>
    %cst_26 = arith.constant -1.000000e+04 : f32
    %68 = vector.broadcast %cst_26 : f32 to vector<4x4xf32>
    %69 = arith.select %36, %67, %68 : vector<4x4xi1>, vector<4x4xf32>
    %70 = vector.broadcast %38 : vector<1x4xf32> to vector<4x4xf32>
    %71 = arith.addf %69, %70 : vector<4x4xf32>
    %cst_27 = arith.constant dense<0xFF800000> : vector<4xf32>
    %72 = vector.multi_reduction <maximumf>, %71, %cst_27 [1] : vector<4x4xf32> to vector<4xf32>
    %73 = vector.shape_cast %72 : vector<4xf32> to vector<4x1xf32>
    %74 = vector.broadcast %73 : vector<4x1xf32> to vector<4x4xf32>
    %75 = arith.subf %71, %74 : vector<4x4xf32>
    %76 = math.exp %75 : vector<4x4xf32>
    %cst_28 = arith.constant dense<0.000000e+00> : vector<4xf32>
    %77 = vector.multi_reduction <add>, %76, %cst_28 [1] : vector<4x4xf32> to vector<4xf32>
    %78 = vector.shape_cast %77 : vector<4xf32> to vector<4x1xf32>
    %79 = tpu.reciprocal %78 {approx = true} : vector<4x1xf32> -> vector<4x1xf32>
    %80 = vector.broadcast %79 : vector<4x1xf32> to vector<4x4xf32>
    %81 = arith.mulf %76, %80 : vector<4x4xf32>
    %cst_29 = arith.constant dense<0.000000e+00> : vector<4x8xf32>
    %82 = tpu.matmul %81, %63, %cst_29 {dimension_numbers = #tpu.dot_dimension_numbers<[1], [0], [0], [1], [0, 0, 1, 1], [], []>} : vector<4x4xf32>, vector<4x8xf32>, vector<4x8xf32> -> vector<4x8xf32>
    %83 = vector.extract_strided_slice %31 {offsets = [0, 16], sizes = [4, 8], strides = [1, 1]} : vector<4x32xf32> to vector<4x8xf32>
    %84 = vector.extract_strided_slice %32 {offsets = [0, 16], sizes = [4, 8], strides = [1, 1]} : vector<4x32xf32> to vector<4x8xf32>
    %85 = vector.extract_strided_slice %33 {offsets = [0, 16], sizes = [4, 8], strides = [1, 1]} : vector<4x32xf32> to vector<4x8xf32>
    %86 = tpu.transpose %84, [1, 0] : vector<4x8xf32> -> vector<8x4xf32>
    %cst_30 = arith.constant dense<0.000000e+00> : vector<4x4xf32>
    %87 = tpu.matmul %83, %86, %cst_30 {dimension_numbers = #tpu.dot_dimension_numbers<[1], [0], [0], [1], [0, 0, 1, 1], [], []>} : vector<4x8xf32>, vector<8x4xf32>, vector<4x4xf32> -> vector<4x4xf32>
    %cst_31 = arith.constant 0.353553385 : f32
    %88 = vector.broadcast %cst_31 : f32 to vector<4x4xf32>
    %89 = arith.mulf %87, %88 : vector<4x4xf32>
    %cst_32 = arith.constant -1.000000e+04 : f32
    %90 = vector.broadcast %cst_32 : f32 to vector<4x4xf32>
    %91 = arith.select %36, %89, %90 : vector<4x4xi1>, vector<4x4xf32>
    %92 = vector.broadcast %38 : vector<1x4xf32> to vector<4x4xf32>
    %93 = arith.addf %91, %92 : vector<4x4xf32>
    %cst_33 = arith.constant dense<0xFF800000> : vector<4xf32>
    %94 = vector.multi_reduction <maximumf>, %93, %cst_33 [1] : vector<4x4xf32> to vector<4xf32>
    %95 = vector.shape_cast %94 : vector<4xf32> to vector<4x1xf32>
    %96 = vector.broadcast %95 : vector<4x1xf32> to vector<4x4xf32>
    %97 = arith.subf %93, %96 : vector<4x4xf32>
    %98 = math.exp %97 : vector<4x4xf32>
    %cst_34 = arith.constant dense<0.000000e+00> : vector<4xf32>
    %99 = vector.multi_reduction <add>, %98, %cst_34 [1] : vector<4x4xf32> to vector<4xf32>
    %100 = vector.shape_cast %99 : vector<4xf32> to vector<4x1xf32>
    %101 = tpu.reciprocal %100 {approx = true} : vector<4x1xf32> -> vector<4x1xf32>
    %102 = vector.broadcast %101 : vector<4x1xf32> to vector<4x4xf32>
    %103 = arith.mulf %98, %102 : vector<4x4xf32>
    %cst_35 = arith.constant dense<0.000000e+00> : vector<4x8xf32>
    %104 = tpu.matmul %103, %85, %cst_35 {dimension_numbers = #tpu.dot_dimension_numbers<[1], [0], [0], [1], [0, 0, 1, 1], [], []>} : vector<4x4xf32>, vector<4x8xf32>, vector<4x8xf32> -> vector<4x8xf32>
    %105 = vector.extract_strided_slice %31 {offsets = [0, 24], sizes = [4, 8], strides = [1, 1]} : vector<4x32xf32> to vector<4x8xf32>
    %106 = vector.extract_strided_slice %32 {offsets = [0, 24], sizes = [4, 8], strides = [1, 1]} : vector<4x32xf32> to vector<4x8xf32>
    %107 = vector.extract_strided_slice %33 {offsets = [0, 24], sizes = [4, 8], strides = [1, 1]} : vector<4x32xf32> to vector<4x8xf32>
    %108 = tpu.transpose %106, [1, 0] : vector<4x8xf32> -> vector<8x4xf32>
    %cst_36 = arith.constant dense<0.000000e+00> : vector<4x4xf32>
    %109 = tpu.matmul %105, %108, %cst_36 {dimension_numbers = #tpu.dot_dimension_numbers<[1], [0], [0], [1], [0, 0, 1, 1], [], []>} : vector<4x8xf32>, vector<8x4xf32>, vector<4x4xf32> -> vector<4x4xf32>
    %cst_37 = arith.constant 0.353553385 : f32
    %110 = vector.broadcast %cst_37 : f32 to vector<4x4xf32>
    %111 = arith.mulf %109, %110 : vector<4x4xf32>
    %cst_38 = arith.constant -1.000000e+04 : f32
    %112 = vector.broadcast %cst_38 : f32 to vector<4x4xf32>
    %113 = arith.select %36, %111, %112 : vector<4x4xi1>, vector<4x4xf32>
    %114 = vector.broadcast %38 : vector<1x4xf32> to vector<4x4xf32>
    %115 = arith.addf %113, %114 : vector<4x4xf32>
    %cst_39 = arith.constant dense<0xFF800000> : vector<4xf32>
    %116 = vector.multi_reduction <maximumf>, %115, %cst_39 [1] : vector<4x4xf32> to vector<4xf32>
    %117 = vector.shape_cast %116 : vector<4xf32> to vector<4x1xf32>
    %118 = vector.broadcast %117 : vector<4x1xf32> to vector<4x4xf32>
    %119 = arith.subf %115, %118 : vector<4x4xf32>
    %120 = math.exp %119 : vector<4x4xf32>
    %cst_40 = arith.constant dense<0.000000e+00> : vector<4xf32>
    %121 = vector.multi_reduction <add>, %120, %cst_40 [1] : vector<4x4xf32> to vector<4xf32>
    %122 = vector.shape_cast %121 : vector<4xf32> to vector<4x1xf32>
    %123 = tpu.reciprocal %122 {approx = true} : vector<4x1xf32> -> vector<4x1xf32>
    %124 = vector.broadcast %123 : vector<4x1xf32> to vector<4x4xf32>
    %125 = arith.mulf %120, %124 : vector<4x4xf32>
    %cst_41 = arith.constant dense<0.000000e+00> : vector<4x8xf32>
    %126 = tpu.matmul %125, %107, %cst_41 {dimension_numbers = #tpu.dot_dimension_numbers<[1], [0], [0], [1], [0, 0, 1, 1], [], []>} : vector<4x4xf32>, vector<4x8xf32>, vector<4x8xf32> -> vector<4x8xf32>
    %127 = tpu.concatenate %60, %82, %104, %126 in 1 : vector<4x8xf32>, vector<4x8xf32>, vector<4x8xf32>, vector<4x8xf32> -> vector<4x32xf32>
    %c0_42 = arith.constant 0 : index
    %c0_43 = arith.constant 0 : index
    %128 = vector.load %arg7[%c0_42, %c0_43] : memref<32x32xf32, #tpu.memory_space<vmem>>, vector<32x32xf32>
    %cst_44 = arith.constant dense<0.000000e+00> : vector<4x32xf32>
    %129 = tpu.matmul %127, %128, %cst_44 {dimension_numbers = #tpu.dot_dimension_numbers<[1], [0], [0], [1], [0, 0, 1, 1], [], []>} : vector<4x32xf32>, vector<32x32xf32>, vector<4x32xf32> -> vector<4x32xf32>
    %c0_45 = arith.constant 0 : index
    %c0_46 = arith.constant 0 : index
    %130 = vector.load %arg8[%c0_45, %c0_46] : memref<1x32xf32, #tpu.memory_space<vmem>>, vector<1x32xf32>
    %131 = vector.broadcast %130 : vector<1x32xf32> to vector<4x32xf32>
    %132 = arith.addf %129, %131 : vector<4x32xf32>
    %133 = arith.addf %1, %132 : vector<4x32xf32>
    %c0_47 = arith.constant 0 : index
    %c0_48 = arith.constant 0 : index
    %134 = vector.load %arg9[%c0_47, %c0_48] : memref<1x32xf32, #tpu.memory_space<vmem>>, vector<1x32xf32>
    %c0_49 = arith.constant 0 : index
    %c0_50 = arith.constant 0 : index
    %135 = vector.load %arg10[%c0_49, %c0_50] : memref<1x32xf32, #tpu.memory_space<vmem>>, vector<1x32xf32>
    %cst_51 = arith.constant dense<0.000000e+00> : vector<4xf32>
    %136 = vector.multi_reduction <add>, %133, %cst_51 [1] : vector<4x32xf32> to vector<4xf32>
    %137 = vector.shape_cast %136 : vector<4xf32> to vector<4x1xf32>
    %cst_52 = arith.constant 3.200000e+01 : f32
    %138 = vector.broadcast %cst_52 : f32 to vector<4x1xf32>
    %139 = arith.divf %137, %138 : vector<4x1xf32>
    %140 = vector.broadcast %139 : vector<4x1xf32> to vector<4x32xf32>
    %141 = arith.subf %133, %140 : vector<4x32xf32>
    %142 = arith.mulf %141, %141 : vector<4x32xf32>
    %cst_53 = arith.constant dense<0.000000e+00> : vector<4xf32>
    %143 = vector.multi_reduction <add>, %142, %cst_53 [1] : vector<4x32xf32> to vector<4xf32>
    %144 = vector.shape_cast %143 : vector<4xf32> to vector<4x1xf32>
    %cst_54 = arith.constant 3.200000e+01 : f32
    %145 = vector.broadcast %cst_54 : f32 to vector<4x1xf32>
    %146 = arith.divf %144, %145 : vector<4x1xf32>
    %147 = vector.broadcast %139 : vector<4x1xf32> to vector<4x32xf32>
    %148 = arith.subf %133, %147 : vector<4x32xf32>
    %cst_55 = arith.constant 9.99999974E-6 : f32
    %149 = vector.broadcast %cst_55 : f32 to vector<4x1xf32>
    %150 = arith.addf %146, %149 : vector<4x1xf32>
    %151 = math.rsqrt %150 : vector<4x1xf32>
    %152 = vector.broadcast %151 : vector<4x1xf32> to vector<4x32xf32>
    %153 = arith.mulf %148, %152 : vector<4x32xf32>
    %154 = vector.broadcast %134 : vector<1x32xf32> to vector<4x32xf32>
    %155 = arith.mulf %153, %154 : vector<4x32xf32>
    %156 = vector.broadcast %135 : vector<1x32xf32> to vector<4x32xf32>
    %157 = arith.addf %155, %156 : vector<4x32xf32>
    %c0_56 = arith.constant 0 : index
    %c0_57 = arith.constant 0 : index
    %158 = vector.load %arg11[%c0_56, %c0_57] : memref<32x128xf32, #tpu.memory_space<vmem>>, vector<32x128xf32>
    %cst_58 = arith.constant dense<0.000000e+00> : vector<4x128xf32>
    %159 = tpu.matmul %157, %158, %cst_58 {dimension_numbers = #tpu.dot_dimension_numbers<[1], [0], [0], [1], [0, 0, 1, 1], [], []>} : vector<4x32xf32>, vector<32x128xf32>, vector<4x128xf32> -> vector<4x128xf32>
    %c0_59 = arith.constant 0 : index
    %c0_60 = arith.constant 0 : index
    %160 = vector.load %arg12[%c0_59, %c0_60] : memref<1x128xf32, #tpu.memory_space<vmem>>, vector<1x128xf32>
    %161 = vector.broadcast %160 : vector<1x128xf32> to vector<4x128xf32>
    %162 = arith.addf %159, %161 : vector<4x128xf32>
    %cst_61 = arith.constant 5.000000e-01 : f32
    %163 = vector.broadcast %cst_61 : f32 to vector<4x128xf32>
    %164 = arith.mulf %163, %162 : vector<4x128xf32>
    %165 = arith.mulf %162, %162 : vector<4x128xf32>
    %166 = arith.mulf %162, %165 : vector<4x128xf32>
    %cst_62 = arith.constant 4.471500e-02 : f32
    %167 = vector.broadcast %cst_62 : f32 to vector<4x128xf32>
    %168 = arith.mulf %167, %166 : vector<4x128xf32>
    %169 = arith.addf %162, %168 : vector<4x128xf32>
    %cst_63 = arith.constant 0.797884583 : f32
    %170 = vector.broadcast %cst_63 : f32 to vector<4x128xf32>
    %171 = arith.mulf %170, %169 : vector<4x128xf32>
    %172 = math.tanh %171 : vector<4x128xf32>
    %cst_64 = arith.constant 1.000000e+00 : f32
    %173 = vector.broadcast %cst_64 : f32 to vector<4x128xf32>
    %174 = arith.addf %173, %172 : vector<4x128xf32>
    %175 = arith.mulf %164, %174 : vector<4x128xf32>
    %c0_65 = arith.constant 0 : index
    %c0_66 = arith.constant 0 : index
    %176 = vector.load %arg13[%c0_65, %c0_66] : memref<128x32xf32, #tpu.memory_space<vmem>>, vector<128x32xf32>
    %cst_67 = arith.constant dense<0.000000e+00> : vector<4x32xf32>
    %177 = tpu.matmul %175, %176, %cst_67 {dimension_numbers = #tpu.dot_dimension_numbers<[1], [0], [0], [1], [0, 0, 1, 1], [], []>} : vector<4x128xf32>, vector<128x32xf32>, vector<4x32xf32> -> vector<4x32xf32>
    %c0_68 = arith.constant 0 : index
    %c0_69 = arith.constant 0 : index
    %178 = vector.load %arg14[%c0_68, %c0_69] : memref<1x32xf32, #tpu.memory_space<vmem>>, vector<1x32xf32>
    %179 = vector.broadcast %178 : vector<1x32xf32> to vector<4x32xf32>
    %180 = arith.addf %177, %179 : vector<4x32xf32>
    %181 = arith.addf %133, %180 : vector<4x32xf32>
    %c0_70 = arith.constant 0 : index
    %c0_71 = arith.constant 0 : index
    %c0_72 = arith.constant 0 : index
    %182 = vector.load %arg15[%c0_70, %c0_71, %c0_72] : memref<1x4x32xf32, #tpu.memory_space<vmem>>, vector<1x4x32xf32>
    %183 = vector.shape_cast %182 : vector<1x4x32xf32> to vector<4x32xf32>
    %184 = vector.shape_cast %181 : vector<4x32xf32> to vector<1x4x32xf32>
    tpu.vector_store %arg15[%c0_70, %c0_71, %c0_72], %184 {strides = array<i32>} : memref<1x4x32xf32, #tpu.memory_space<vmem>>, vector<1x4x32xf32>,
    return
  }
  func.func @transform_0(%arg0: i32) -> (i32, i32, i32) {
    %c0_i32 = arith.constant 0 : i32
    %c0_i32_0 = arith.constant 0 : i32
    %c0_i32_1 = arith.constant 0 : i32
    return %arg0, %c0_i32, %c0_i32_0 : i32, i32, i32
  }
  func.func @transform_1(%arg0: i32) -> (i32, i32, i32) {
    %c0_i32 = arith.constant 0 : i32
    %c0_i32_0 = arith.constant 0 : i32
    %c0_i32_1 = arith.constant 0 : i32
    return %arg0, %c0_i32, %c0_i32_0 : i32, i32, i32
  }
  func.func @transform_2(%arg0: i32) -> (i32, i32) {
    %c0_i32 = arith.constant 0 : i32
    %c0_i32_0 = arith.constant 0 : i32
    %c0_i32_1 = arith.constant 0 : i32
    return %c0_i32, %c0_i32_0 : i32, i32
  }
  func.func @transform_3(%arg0: i32) -> (i32, i32) {
    %c0_i32 = arith.constant 0 : i32
    %c0_i32_0 = arith.constant 0 : i32
    %c0_i32_1 = arith.constant 0 : i32
    return %c0_i32, %c0_i32_0 : i32, i32
  }
  func.func @transform_4(%arg0: i32) -> (i32, i32) {
    %c0_i32 = arith.constant 0 : i32
    %c0_i32_0 = arith.constant 0 : i32
    %c0_i32_1 = arith.constant 0 : i32
    return %c0_i32, %c0_i32_0 : i32, i32
  }
  func.func @transform_5(%arg0: i32) -> (i32, i32) {
    %c0_i32 = arith.constant 0 : i32
    %c0_i32_0 = arith.constant 0 : i32
    %c0_i32_1 = arith.constant 0 : i32
    return %c0_i32, %c0_i32_0 : i32, i32
  }
  func.func @transform_6(%arg0: i32) -> (i32, i32) {
    %c0_i32 = arith.constant 0 : i32
    %c0_i32_0 = arith.constant 0 : i32
    %c0_i32_1 = arith.constant 0 : i32
    return %c0_i32, %c0_i32_0 : i32, i32
  }
  func.func @transform_7(%arg0: i32) -> (i32, i32) {
    %c0_i32 = arith.constant 0 : i32
    %c0_i32_0 = arith.constant 0 : i32
    %c0_i32_1 = arith.constant 0 : i32
    return %c0_i32, %c0_i32_0 : i32, i32
  }
  func.func @transform_8(%arg0: i32) -> (i32, i32) {
    %c0_i32 = arith.constant 0 : i32
    %c0_i32_0 = arith.constant 0 : i32
    %c0_i32_1 = arith.constant 0 : i32
    return %c0_i32, %c0_i32_0 : i32, i32
  }
  func.func @transform_9(%arg0: i32) -> (i32, i32) {
    %c0_i32 = arith.constant 0 : i32
    %c0_i32_0 = arith.constant 0 : i32
    %c0_i32_1 = arith.constant 0 : i32
    return %c0_i32, %c0_i32_0 : i32, i32
  }
  func.func @transform_10(%arg0: i32) -> (i32, i32) {
    %c0_i32 = arith.constant 0 : i32
    %c0_i32_0 = arith.constant 0 : i32
    %c0_i32_1 = arith.constant 0 : i32
    return %c0_i32, %c0_i32_0 : i32, i32
  }
  func.func @transform_11(%arg0: i32) -> (i32, i32) {
    %c0_i32 = arith.constant 0 : i32
    %c0_i32_0 = arith.constant 0 : i32
    %c0_i32_1 = arith.constant 0 : i32
    return %c0_i32, %c0_i32_0 : i32, i32
  }
  func.func @transform_12(%arg0: i32) -> (i32, i32) {
    %c0_i32 = arith.constant 0 : i32
    %c0_i32_0 = arith.constant 0 : i32
    %c0_i32_1 = arith.constant 0 : i32
    return %c0_i32, %c0_i32_0 : i32, i32
  }
  func.func @transform_13(%arg0: i32) -> (i32, i32) {
    %c0_i32 = arith.constant 0 : i32
    %c0_i32_0 = arith.constant 0 : i32
    %c0_i32_1 = arith.constant 0 : i32
    return %c0_i32, %c0_i32_0 : i32, i32
  }
  func.func @transform_14(%arg0: i32) -> (i32, i32, i32) {
    %c0_i32 = arith.constant 0 : i32
    %c0_i32_0 = arith.constant 0 : i32
    %c0_i32_1 = arith.constant 0 : i32
    return %arg0, %c0_i32, %c0_i32_0 : i32, i32, i32
  }
}

module attributes {stable_mosaic.version = 11 : i64} {
  func.func @_matmul_nobias_kernel(%arg0: memref<42x64xf32, #tpu.memory_space<vmem>>, %arg1: memref<64x128xf32, #tpu.memory_space<vmem>>, %arg2: memref<42x128xf32, #tpu.memory_space<vmem>>) attributes {dimension_semantics = [], scalar_prefetch = 0 : i64, scratch_operands = 0 : i64, tpu.core_type = #tpu.core_type<tc>} {
    %c0 = arith.constant 0 : index
    %c0_0 = arith.constant 0 : index
    %0 = vector.load %arg0[%c0, %c0_0] : memref<42x64xf32, #tpu.memory_space<vmem>>, vector<42x64xf32>
    %c0_1 = arith.constant 0 : index
    %c0_2 = arith.constant 0 : index
    %1 = vector.load %arg1[%c0_1, %c0_2] : memref<64x128xf32, #tpu.memory_space<vmem>>, vector<64x128xf32>
    %cst = arith.constant dense<0.000000e+00> : vector<42x128xf32>
    %2 = tpu.matmul %0, %1, %cst {dimension_numbers = #tpu.dot_dimension_numbers<[1], [0], [0], [1], [0, 0, 1, 1], [], []>} : vector<42x64xf32>, vector<64x128xf32>, vector<42x128xf32> -> vector<42x128xf32>
    %c0_3 = arith.constant 0 : index
    %c0_4 = arith.constant 0 : index
    %3 = vector.load %arg2[%c0_3, %c0_4] : memref<42x128xf32, #tpu.memory_space<vmem>>, vector<42x128xf32>
    tpu.vector_store %arg2[%c0_3, %c0_4], %2 {strides = array<i32>} : memref<42x128xf32, #tpu.memory_space<vmem>>, vector<42x128xf32>,
    return
  }
}

module attributes {stable_mosaic.version = 11 : i64} {
  func.func @_matmul_nobias_kernel(%arg0: memref<6x32xf32, #tpu.memory_space<vmem>>, %arg1: memref<32x128xf32, #tpu.memory_space<vmem>>, %arg2: memref<6x128xf32, #tpu.memory_space<vmem>>) attributes {dimension_semantics = [], scalar_prefetch = 0 : i64, scratch_operands = 0 : i64, tpu.core_type = #tpu.core_type<tc>} {
    %c0 = arith.constant 0 : index
    %c0_0 = arith.constant 0 : index
    %0 = vector.load %arg0[%c0, %c0_0] : memref<6x32xf32, #tpu.memory_space<vmem>>, vector<6x32xf32>
    %c0_1 = arith.constant 0 : index
    %c0_2 = arith.constant 0 : index
    %1 = vector.load %arg1[%c0_1, %c0_2] : memref<32x128xf32, #tpu.memory_space<vmem>>, vector<32x128xf32>
    %cst = arith.constant dense<0.000000e+00> : vector<6x128xf32>
    %2 = tpu.matmul %0, %1, %cst {dimension_numbers = #tpu.dot_dimension_numbers<[1], [0], [0], [1], [0, 0, 1, 1], [], []>} : vector<6x32xf32>, vector<32x128xf32>, vector<6x128xf32> -> vector<6x128xf32>
    %c0_3 = arith.constant 0 : index
    %c0_4 = arith.constant 0 : index
    %3 = vector.load %arg2[%c0_3, %c0_4] : memref<6x128xf32, #tpu.memory_space<vmem>>, vector<6x128xf32>
    tpu.vector_store %arg2[%c0_3, %c0_4], %2 {strides = array<i32>} : memref<6x128xf32, #tpu.memory_space<vmem>>, vector<6x128xf32>,
    return
  }
}

</mosaic_0001>

<bundles_post_ra>
// kernel: dpks_forward.9
= control target key start
LH: loop header
LB: loop body
LE: loop exit
PB: predicated region body
PF: predicated region fallthrough
CT: control target
= control target key end

     0   :  { %vm20_vm0 = vcmask 261120   ;;  %s174_s0 = inlined_call_operand.vmem [shape: f32[32,32], index: 0, kind: input, shape index: {}]   ;;  %s175_s1 = inlined_call_operand.vmem [shape: f32[1,32], index: 1, kind: input, shape index: {}]   ;;  %s176_s2 = inlined_call_operand.vmem [shape: f32[1,32], index: 2, kind: input, shape index: {}]   ;;  %s177_s3 = inlined_call_operand.vmem [shape: f32[32,32], index: 3, kind: output, shape index: {}]  }
   0x1   :  { %v14_v0 = vld [vmem:[%s174_s0] sm:$0xff]  ;;  %v16_v1 = vld [vmem:[%s174_s0 + $0x10] sm:$0xff]  ;;  %v15_v2 = vld [vmem:[%s174_s0 + $0x8] sm:$0xff] }
   0x2   :  { %v21_v3 = vsel %vm20_vm0, %v14_v0, 0.0  ;;  %v27_v4 = vsel %vm20_vm0, %v16_v1, 0.0  ;;  %v17_v5 = vld [vmem:[%s174_s0 + $0x18] sm:$0xff]  ;;  %v24_v6 = vsel %vm20_vm0, %v15_v2, 0.0  ;;  %v102_v41 = vld [vmem:[%s175_s1] ss:$0 sm:$0xff] }
   0x3   :  { %22 = vadd.xlane.f32.xlu0 %v21_v3  ;;  %28 = vadd.xlane.f32.xlu1 %v27_v4  ;;  %v30_v7 = vsel %vm20_vm0, %v17_v5, 0.0  ;;  %v103_v43 = vld [vmem:[%s176_s2] ss:$0 sm:$0xff] }
   0x7   :  { %25 = vadd.xlane.f32.xlu0 %v24_v6  ;;  %31 = vadd.xlane.f32.xlu1 %v30_v7 }
  0x90   :  { %v23_v8 = vpop.xlane.xlu0 %22  ;;  %v29_v9 = vpop.xlane.xlu1 %28 }
  0x91   :  { %v34_v10 = vmul.f32 0.03125, %v23_v8  ;;  %v36_v11 = vmul.f32 0.03125, %v29_v9 }
  0x93   :  { %v38_v12 = vsub.f32 %v14_v0, %v34_v10  ;;  %v40_v13 = vsub.f32 %v16_v1, %v36_v11 }
  0x94   :  { %v26_v14 = vpop.xlane.xlu0 %25  ;;  %v32_v15 = vpop.xlane.xlu1 %31 }
  0x95   :  { %v35_v16 = vmul.f32 0.03125, %v26_v14  ;;  %v37_v17 = vmul.f32 0.03125, %v32_v15  ;;  %v42_v18 = vmul.f32 %v38_v12, %v38_v12  ;;  %v44_v19 = vmul.f32 %v40_v13, %v40_v13 }
  0x97   :  { %v39_v20 = vsub.f32 %v15_v2, %v35_v16  ;;  %v41_v21 = vsub.f32 %v17_v5, %v37_v17  ;;  %v46_v22 = vsel %vm20_vm0, %v42_v18, 0.0  ;;  %v52_v23 = vsel %vm20_vm0, %v44_v19, 0.0 }
  0x98   :  { %47 = vadd.xlane.f32.xlu0 %v46_v22 }
  0x99   :  { %v43_v24 = vmul.f32 %v39_v20, %v39_v20  ;;  %v45_v25 = vmul.f32 %v41_v21, %v41_v21 }
  0x9b   :  { %v49_v26 = vsel %vm20_vm0, %v43_v24, 0.0  ;;  %v55_v27 = vsel %vm20_vm0, %v45_v25, 0.0 }
  0x9c   :  { %53 = vadd.xlane.f32.xlu0 %v52_v23  ;;  %50 = vadd.xlane.f32.xlu1 %v49_v26 }
  0xa0   :  { %56 = vadd.xlane.f32.xlu1 %v55_v27 }
 0x125   :  { %v48_v28 = vpop.xlane.xlu0 %47 }
 0x126   :  { %v58_v29 = vmul.f32 0.03125, %v48_v28 }
 0x128   :  { %v62_v30 = vadd.f32 1e-05, %v58_v29 }
 0x129   :  { %v51_v31 = vpop.xlane.xlu1 %50  ;;  %v54_v32 = vpop.xlane.xlu0 %53 }
 0x12a   :  { %104 = vrsqrt.f32 %v62_v30  ;;  %v59_v33 = vmul.f32 0.03125, %v51_v31  ;;  %v60_v34 = vmul.f32 0.03125, %v54_v32 }
 0x12c   :  { %v63_v35 = vadd.f32 1e-05, %v59_v33  ;;  %v64_v36 = vadd.f32 1e-05, %v60_v34 }
 0x12d   :  { %v57_v37 = vpop.xlane.xlu1 %56 }
 0x12e   :  { %106 = vrsqrt.f32 %v63_v35  ;;  %v61_v38 = vmul.f32 0.03125, %v57_v37 }
 0x12f   :  { %108 = vrsqrt.f32 %v64_v36 }
 0x130   :  { %v65_v39 = vadd.f32 1e-05, %v61_v38 }
 0x132   :  { %110 = vrsqrt.f32 %v65_v39 }
 0x134   :  { %v105_v40 = vpop.eup %104 }
 0x135   :  { %v70_v42 = vmul.f32 %v105_v40, %v38_v12 }
 0x137   :  { %v80_v44 = vmul.f32 %v102_v41, %v70_v42 }
 0x138   :  { %v107_v45 = vpop.eup %106 }
 0x139   :  { %v109_v46 = vpop.eup %108  ;;  %v90_v47 = vadd.f32 %v103_v43, %v80_v44  ;;  %v71_v48 = vmul.f32 %v107_v45, %v39_v20 }
 0x13a   :  { %v72_v49 = vmul.f32 %v109_v46, %v40_v13 }
 0x13b   :  { %94 = vst.msk [vmem:[%s177_s3] sm:$0xff] %vm20_vm0, %v90_v47  ;;  %v81_v50 = vmul.f32 %v102_v41, %v71_v48 }
 0x13c   :  { %v111_v51 = vpop.eup %110  ;;  %v82_v52 = vmul.f32 %v102_v41, %v72_v49 }
 0x13d   :  { %v91_v53 = vadd.f32 %v103_v43, %v81_v50  ;;  %v73_v54 = vmul.f32 %v111_v51, %v41_v21 }
 0x13e   :  { %v92_v55 = vadd.f32 %v103_v43, %v82_v52 }
 0x13f   :  { %95 = vst.msk [vmem:[%s177_s3 + $0x8] sm:$0xff] %vm20_vm0, %v91_v53  ;;  %v83_v56 = vmul.f32 %v102_v41, %v73_v54 }
 0x140   :  { %96 = vst.msk [vmem:[%s177_s3 + $0x10] sm:$0xff] %vm20_vm0, %v92_v55 }
 0x141   :  { %v93_v57 = vadd.f32 %v103_v43, %v83_v56 }
 0x143   :  { %97 = vst.msk [vmem:[%s177_s3 + $0x18] sm:$0xff] %vm20_vm0, %v93_v57 }

// kernel: dpks_forward.11
= control target key start
LH: loop header
LB: loop body
LE: loop exit
PB: predicated region body
PF: predicated region fallthrough
CT: control target
= control target key end

     0   :  { %vm17_vm0 = vcmask 261120   ;;  %s90_s0 = inlined_call_operand.vmem [shape: f32[8,32], index: 0, kind: input, shape index: {}]   ;;  %s91_s1 = inlined_call_operand.vmem [shape: f32[1,32], index: 1, kind: input, shape index: {}]   ;;  %s92_s2 = inlined_call_operand.vmem [shape: f32[1,32], index: 2, kind: input, shape index: {}]   ;;  %s93_s3 = inlined_call_operand.vmem [shape: f32[8,32], index: 3, kind: output, shape index: {}]  }
   0x1   :  { %v14_v0 = vld [vmem:[%s90_s0] sm:$0xff] }
   0x2   :  { %v18_v1 = vsel %vm17_vm0, %v14_v0, 0.0  ;;  %v51_v11 = vld [vmem:[%s91_s1] ss:$0 sm:$0xff] }
   0x3   :  { %19 = vadd.xlane.f32.xlu0 %v18_v1  ;;  %v52_v13 = vld [vmem:[%s92_s2] ss:$0 sm:$0xff] }
  0x90   :  { %v20_v2 = vpop.xlane.xlu0 %19 }
  0x91   :  { %v22_v3 = vmul.f32 0.03125, %v20_v2 }
  0x93   :  { %v23_v4 = vsub.f32 %v14_v0, %v22_v3 }
  0x95   :  { %v24_v5 = vmul.f32 %v23_v4, %v23_v4 }
  0x97   :  { %v25_v6 = vsel %vm17_vm0, %v24_v5, 0.0 }
  0x98   :  { %26 = vadd.xlane.f32.xlu0 %v25_v6 }
 0x125   :  { %v27_v7 = vpop.xlane.xlu0 %26 }
 0x126   :  { %v28_v8 = vmul.f32 0.03125, %v27_v7 }
 0x128   :  { %v29_v9 = vadd.f32 1e-05, %v28_v8 }
 0x12a   :  { %53 = vrsqrt.f32 %v29_v9 }
 0x134   :  { %v54_v10 = vpop.eup %53 }
 0x135   :  { %v31_v12 = vmul.f32 %v54_v10, %v23_v4 }
 0x137   :  { %v38_v14 = vmul.f32 %v51_v11, %v31_v12 }
 0x139   :  { %v45_v15 = vadd.f32 %v52_v13, %v38_v14 }
 0x13b   :  { %46 = vst.msk [vmem:[%s93_s3] sm:$0xff] %vm17_vm0, %v45_v15 }

// kernel: dpks_forward.7
= control target key start
LH: loop header
LB: loop body
LE: loop exit
PB: predicated region body
PF: predicated region fallthrough
CT: control target
= control target key end

     0   :  { %s2448_s29 = smov 0   ;;  %s2763_s0 = inlined_call_operand.vmem [shape: f32[2,16,32], index: 0, kind: input, shape index: {}]   ;;  %s2764_s1 = inlined_call_operand.vmem [shape: f32[2,1,16], index: 1, kind: input, shape index: {}]   ;;  %s2765_s2 = inlined_call_operand.vmem [shape: f32[1,32], index: 2, kind: input, shape index: {}]   ;;  %s2766_s3 = inlined_call_operand.vmem [shape: f32[1,32], index: 3, kind: input, shape index: {}]   ;;  %s2767_s4 = inlined_call_operand.vmem [shape: f32[32,96], index: 4, kind: input, shape index: {}]   ;;  %s2768_s5 = inlined_call_operand.vmem [shape: f32[1,96], index: 5, kind: input, shape index: {}]   ;;  %s2769_s6 = inlined_call_operand.vmem [shape: f32[32,32], index: 6, kind: input, shape index: {}]   ;;  %s2770_s7 = inlined_call_operand.vmem [shape: f32[1,32], index: 7, kind: input, shape index: {}]   ;;  %s2771_s8 = inlined_call_operand.vmem [shape: f32[1,32], index: 8, kind: input, shape index: {}]   ;;  %s2772_s9 = inlined_call_operand.vmem [shape: f32[1,32], index: 9, kind: input, shape index: {}]   ;;  %s2773_s10 = inlined_call_operand.vmem [shape: f32[32,128], index: 10, kind: input, shape index: {}]   ;;  %s2774_s11 = inlined_call_operand.vmem [shape: f32[1,128], index: 11, kind: input, shape index: {}]   ;;  %s2775_s12 = inlined_call_operand.vmem [shape: f32[128,32], index: 12, kind: input, shape index: {}]   ;;  %s2776_s13 = inlined_call_operand.vmem [shape: f32[1,32], index: 13, kind: input, shape index: {}]   ;;  %s2777_s14 = inlined_call_operand.vmem [shape: f32[2,16,32], index: 14, kind: output, shape index: {}]  }
   0x1 LB: > { %s1905_s30 = sadd.s32 4294967295, %s2357_s29   ;;  %p1909_p0 = scmp.ge.s32.totalorder %s2357_s29, 1  ;;  %s2357_s29 = sphi %s2448_s29, %s24_s29  }
   0x2   : > { %p420_p1 = scmp.lt.s32.totalorder %s2357_s29, 3 }
   0x4   : > { %p421_p2 = pnand %p1909_p0, %p420_p1 }
   0x5   : > { %p469_p3 = scmp.lt.s32.totalorder (!%p421_p2), %s1905_s30, 1  ;;  %vm486_vm0 = vcmask (!%p421_p2), 261120   ;;  %v530_v14 = vld [vmem:[%s2767_s4] sm:$0xff] (!%p421_p2)  ;;  %v531_v15 = vld [vmem:[%s2767_s4 + $0x8] sm:$0xff] (!%p421_p2)  ;;  %v532_v16 = vld [vmem:[%s2767_s4 + $0x10] sm:$0xff] (!%p421_p2)  ;;  %vm636_vm1 = vcmask (!%p421_p2), 64512   ;;  %v622_v61 = vlaneseq (!%p421_p2) }
   0x6   : > { %424 = sbr.rel (%p421_p2) target bundleno = 3102 (0xc1e), region = 76  ;;  %v2149_v17 = vpack.c.bf16 (!%p421_p2), %v531_v15, %v530_v14  ;;  %v533_v18 = vld [vmem:[%s2767_s4 + $0x18] sm:$0xff] (!%p421_p2)  ;;  %v1914_v27 = vld [vmem:[%s2765_s2] ss:$0 sm:$0xff] (!%p421_p2)  ;;  %s2359_s20 = smov (!%p421_p2), 88   ;;  %vm2518_vm2 = vmpackc.low (!%p421_p2), %vm636_vm1, %vm636_vm1  ;;  %vm732_vm5 = vcmask (!%p421_p2), 130048  }
   0x7   : > { %v2153_v19 = vpack.c.bf16 (!%p421_p2), %v533_v18, %v532_v16  ;;  %v1915_v29 = vld [vmem:[%s2766_s3] ss:$0 sm:$0xff] (!%p421_p2)  ;;  %s2360_s21 = smov (!%p421_p2), 96   ;;  %s2361_s22 = smov (!%p421_p2), 80   ;;  %vm1488_vm6 = vcmask (!%p421_p2), 195584  }
   0x8   : > { %2150 = vmatprep.subr.bf16.mxu1 (!%p421_p2), %v2149_v17  ;;  %v1916_v36 = vld [vmem:[%s2768_s5] ss:$0 sm:$0xff] (!%p421_p2)  ;;  %s2362_s23 = smov (!%p421_p2), 120   ;;  %s2363_s24 = smov (!%p421_p2), 112  }
   0x9   : > { %2152 = vmatpush3.bf16.msra.mxu1 (!%p421_p2), %v2149_v17  ;;  %s2364_s28 = smov (!%p421_p2), 48   ;;  %s2365_s16 = smov (!%p421_p2), 104  }
   0xa   : > { %2154 = vmatprep.subr.bf16.mxu1 (!%p421_p2), %v2153_v19  ;;  %s2366_s17 = smov (!%p421_p2), 72   ;;  %s2368_s19 = smov (!%p421_p2), 40  }
   0xd   : > { %s2781_s30 = smov (!%p469_p3, %s1905_s30), 1  ;;  %2156 = vmatpush3.bf16.msra.mxu1 %v2153_v19 }
   0xe   : > { %s1955_s15 = sshll.u32 %s2781_s30, 4  ;;  %s476_s27 = scalar_lea.vmem %s2764_s1, %s2781_s30 }
   0xf   : > { %s473_s18 = scalar_lea.vmem %s2763_s0, %s1955_s15 }
  0x10   : > { %v2464_v0 = vld [vmem:[%s473_s18] sm:$0xff]  ;;  %v2466_v1 = vld [vmem:[%s473_s18 + $0x8] sm:$0xff]  ;;  %s2367_s18 = smov 64  }
  0x11   : > { %v487_v2 = vsel %vm486_vm0, %v2464_v0, 0.0  ;;  %v490_v3 = vsel %vm486_vm0, %v2466_v1, 0.0 }
  0x12   : > { %488 = vadd.xlane.f32.xlu0 %v487_v2  ;;  %v2540_v2 = vshrl.u32 %v622_v61, 7 }
  0x16   : > { %491 = vadd.xlane.f32.xlu0 %v490_v3  ;;  %v2543_v3 = vadd.s32 8, %v2540_v2 }
  0x9f   : > { %v489_v4 = vpop.xlane.xlu0 %488 }
  0xa0   : > { %v494_v5 = vmul.f32 0.03125, %v489_v4  ;;  %v2545_v4 = vand.u32 127, %v622_v61 }
  0xa2   : > { %v496_v6 = vsub.f32 %v2464_v0, %v494_v5  ;;  %vm628_vm3 = vcmp.le.s32.totalorder %v2545_v4, %v2543_v3  ;;  %vm627_vm4 = vcmp.le.s32.totalorder %v2545_v4, %v2540_v2 }
  0xa3   : > { %v492_v7 = vpop.xlane.xlu0 %491 }
  0xa4   : > { %v495_v8 = vmul.f32 0.03125, %v492_v7  ;;  %v498_v9 = vmul.f32 %v496_v6, %v496_v6 }
  0xa6   : > { %v497_v10 = vsub.f32 %v2466_v1, %v495_v8  ;;  %v500_v11 = vsel %vm486_vm0, %v498_v9, 0.0  ;;  %v2553_v9 = vld [vmem:[%s476_s27] ss:$0 sm:$0xff] }
  0xa7   : > { %501 = vadd.xlane.f32.xlu1 %v500_v11 }
  0xa8   : > { %v499_v12 = vmul.f32 %v497_v10, %v497_v10 }
  0xaa   : > { %v503_v13 = vsel %vm486_vm0, %v499_v12, 0.0 }
  0xab   : > { %504 = vadd.xlane.f32.xlu1 %v503_v13 }
 0x134   : > { %v502_v20 = vpop.xlane.xlu1 %501 }
 0x135   : > { %v506_v21 = vmul.f32 0.03125, %v502_v20 }
 0x137   : > { %v508_v22 = vadd.f32 1e-05, %v506_v21 }
 0x138   : > { %v505_v23 = vpop.xlane.xlu1 %504 }
 0x139   : > { %2307 = vrsqrt.f32 %v508_v22  ;;  %v507_v24 = vmul.f32 0.03125, %v505_v23 }
 0x13b   : > { %v509_v25 = vadd.f32 1e-05, %v507_v24 }
 0x13d   : > { %2309 = vrsqrt.f32 %v509_v25 }
 0x143   : > { %v2308_v26 = vpop.eup %2307 }
 0x144   : > { %v512_v28 = vmul.f32 %v2308_v26, %v496_v6 }
 0x146   : > { %v520_v30 = vmul.f32 %v1914_v27, %v512_v28 }
 0x147   : > { %v2310_v31 = vpop.eup %2309 }
 0x148   : > { %v513_v32 = vmul.f32 %v2310_v31, %v497_v10  ;;  %v528_v33 = vadd.f32 %v1915_v29, %v520_v30 }
 0x14a   : > { %v521_v34 = vmul.f32 %v1914_v27, %v513_v32  ;;  %2033 = vmatprep.mubr.msk.f32.mxu1 %vm486_vm0, %v528_v33 }
 0x14c   : > { %v529_v35 = vadd.f32 %v1915_v29, %v521_v34 }
 0x14e   : > { %2034 = vmatmul.mubr.msk.f32.vlgmr.msra.gmra.mrb[0].mxu1 %vm486_vm0, %v529_v35 }
 0x221   : > { %v2035_v37 = vpop.f32.mrb[0].mxu1 }
 0x222   : > { %v2499_v38 = vadd.f32 %v2035_v37, %v1916_v36  ;;  %v613_v39 = vpop.f32.mrb[1].mxu1 }
 0x223   : > { %v2501_v40 = vadd.f32 %v1916_v36, %v613_v39 }
 0x225   : > { %2040 = vmatprep.mubr.msk.f32.mxu1 %vm636_vm1, %v2501_v40  ;;  %v2507_v41 = vpack.i.bf16 %v2499_v38, %v2501_v40 }
 0x227   : > { %2273 = vrot.lane.b32.xlu1 %v2507_v41, %s2359_s20  ;;  %2268 = vrot.lane.b32.xlu0 %v2507_v41, %s2360_s21  ;;  %s2369_s20 = smov 56   ;;  %s2370_s21 = smov 16  }
 0x22b   : > { %2278 = vrot.lane.b32.xlu1 %v2507_v41, %s2361_s22  ;;  %844 = vrot.lane.b32.xlu0 %v2499_v38, %s2362_s23 }
 0x22f   : > { %842 = vrot.lane.b32.xlu1 %v2501_v40, %s2362_s23  ;;  %1050 = vrot.lane.b32.xlu0 %v2499_v38, %s2363_s24 }
 0x233   : > { %1048 = vrot.lane.b32.xlu1 %v2501_v40, %s2363_s24 }
 0x299   : > { %v2274_v42 = vpop.permute.xlu1 %2273  ;;  %v2269_v43 = vpop.permute.xlu0 %2268 }
 0x29a   : > { %v2276_v44 = vunpack.i.h.bf16 %v2274_v42  ;;  %v2275_v45 = vunpack.i.l.bf16 %v2274_v42  ;;  %v2271_v46 = vunpack.i.h.bf16 %v2269_v43  ;;  %v2270_v47 = vunpack.i.l.bf16 %v2269_v43 }
 0x29c   : > { %v2157_v49 = vpack.c.bf16 %v2271_v46, %v2270_v47  ;;  %v2167_v50 = vpack.c.bf16 %v2276_v44, %v2275_v45 }
 0x29d   : > { %v2279_v51 = vpop.permute.xlu1 %2278  ;;  %v845_v56 = vpop.permute.xlu0 %844 }
 0x29e   : > { %2159 = vmatprep.subr.msk.bf16.mxu1 %vm2518_vm2, %v2157_v49  ;;  %v2281_v52 = vunpack.i.h.bf16 %v2279_v51  ;;  %v2280_v53 = vunpack.i.l.bf16 %v2279_v51 }
 0x29f   : > { %2162 = vmatpush3.bf16.xpose.msk.msra.mxu1 %vm2518_vm2, %v2157_v49 }
 0x2a0   : > { %2169 = vmatprep.subr.msk.bf16.mxu1 %vm2518_vm2, %v2167_v50  ;;  %v2177_v54 = vpack.c.bf16 %v2281_v52, %v2280_v53 }
 0x2a1   : > { %v843_v55 = vpop.permute.xlu1 %842  ;;  %v1051_v58 = vpop.permute.xlu0 %1050 }
 0x2a5   : > { %v1049_v57 = vpop.permute.xlu1 %1048 }
 0x2a6   : > { %2041 = vmatmul.mubr.msk.f32.vlgmr.msra.gmra.mrb[2].mxu1 %vm636_vm1, %v2499_v38 }
 0x2a7   : > { %2172 = vmatpush3.bf16.xpose.msk.msra.mxu1 %vm2518_vm2, %v2167_v50  ;;  %2054 = vmatprep.mubr.msk.f32.mxu1 %vm636_vm1, %v843_v55 }
 0x2a8   : > { %2179 = vmatprep.subr.msk.bf16.mxu1 %vm2518_vm2, %v2177_v54 }
 0x2ae   : > { %2055 = vmatmul.mubr.msk.f32.vlgmr.msra.gmra.mrb[4].mxu1 %vm636_vm1, %v845_v56 }
 0x2af   : > { %2182 = vmatpush3.bf16.xpose.msk.msra.mxu1 %vm2518_vm2, %v2177_v54  ;;  %2068 = vmatprep.mubr.msk.f32.mxu1 %vm636_vm1, %v1049_v57 }
 0x2b6   : > { %2069 = vmatmul.mubr.msk.f32.vlgmr.msra.gmra.mrb[6].mxu1 %vm636_vm1, %v1051_v58 }
 0x379   : > { %v2042_v59 = vpop.f32.mrb[2].mxu1 }
 0x37a   : > { %v711_v60 = vpop.f32.mrb[3].mxu1  ;;  %v721_v34 = vmul.f32 0.35355338, %v2042_v59 }
 0x37b   : > { %v720_v16 = vmul.f32 0.35355338, %v711_v60 }
 0x37c   : > { %v723_v35 = vsel %vm628_vm3, %v721_v34, -10000.0 }
 0x37d   : > { %v722_v17 = vsel %vm627_vm4, %v720_v16, -10000.0  ;;  %v731_v37 = vadd.f32 %v2553_v9, %v723_v35 }
 0x37e   : > { %v2574_v18 = vadd.f32 %v2553_v9, %v722_v17 }
 0x380   : > { %v733_v19 = vsel %vm732_vm5, %v2574_v18, -inf }
 0x381   : > { %v2056_v62 = vpop.f32.mrb[4].mxu1 }
 0x382   : > { %v924_v63 = vpop.f32.mrb[5].mxu1 }
 0x383   : > { %v933_v36 = vmul.f32 0.35355338, %v924_v63 }
 0x385   : > { %v935_v39 = vsel %vm627_vm4, %v933_v36, -10000.0 }
 0x386   : > { %v937_v42 = vadd.f32 %v2553_v9, %v935_v39 }
 0x388   : > { %v939_v44 = vsel %vm732_vm5, %v937_v42, -inf }
 0x389   : > { %v2070_v5 = vpop.f32.mrb[6].mxu1 }
 0x38a   : > { %v1140_v6 = vmul.f32 0.35355338, %v2070_v5  ;;  %v1130_v7 = vpop.f32.mrb[7].mxu1 }
 0x38b   : > { %v1139_v8 = vmul.f32 0.35355338, %v1130_v7 }
 0x38c   : > { %v1142_v10 = vsel %vm628_vm3, %v1140_v6, -10000.0 }
 0x38d   : > { %v1141_v11 = vsel %vm627_vm4, %v1139_v8, -10000.0  ;;  %v1144_v12 = vadd.f32 %v2553_v9, %v1142_v10 }
 0x38e   : > { %v1143_v13 = vadd.f32 %v2553_v9, %v1141_v11 }
 0x38f   : > { %v1148_v14 = vsel %vm732_vm5, %v1144_v12, -inf }
 0x390   : > { %1149 = vmax.xlane.f32.xlu0 %v1148_v14  ;;  %v1145_v15 = vsel %vm732_vm5, %v1143_v13, -inf }
 0x391   : > { %1146 = vmax.xlane.f32.xlu1 %v1145_v15 }
 0x3a2   : > { %2283 = vrot.lane.b32.xlu1 %v2507_v41, %s2364_s28 }
 0x3a6   : > { %1254 = vrot.lane.b32.xlu1 %v2501_v40, %s2365_s16  ;;  %v736_v40 = vsel %vm732_vm5, %v731_v37, -inf }
 0x3aa   : > { %1256 = vrot.lane.b32.xlu1 %v2499_v38, %s2365_s16  ;;  %v934_v38 = vmul.f32 0.35355338, %v2056_v62 }
 0x3ac   : > { %v936_v43 = vsel %vm628_vm3, %v934_v38, -10000.0 }
 0x3ad   : > { %v938_v45 = vadd.f32 %v2553_v9, %v936_v43 }
 0x3af   : > { %v942_v46 = vsel %vm732_vm5, %v938_v45, -inf }
 0x3ce   : > { %734 = vmax.xlane.f32.xlu1 %v733_v19 }
 0x41d   : > { %v1150_v20 = vpop.xlane.xlu0 %1149 }
 0x41e   : > { %v1152_v21 = vsub.f32 %v1144_v12, %v1150_v20  ;;  %v1147_v22 = vpop.xlane.xlu1 %1146 }
 0x41f   : > { %v1151_v23 = vsub.f32 %v1143_v13, %v1147_v22 }
 0x420   : > { %v1155_v24 = vmul.f32 1.442695, %v1152_v21 }
 0x421   : > { %v1153_v25 = vmul.f32 1.442695, %v1151_v23 }
 0x422   : > { %2311 = vpow2.f32 %v1155_v24  ;;  %v2284_v26 = vpop.permute.xlu1 %2283 }
 0x423   : > { %v2286_v27 = vunpack.i.h.bf16 %v2284_v26  ;;  %v2285_v28 = vunpack.i.l.bf16 %v2284_v26  ;;  %2313 = vpow2.f32 %v1153_v25 }
 0x425   : > { %v2183_v29 = vpack.c.bf16 %v2286_v27, %v2285_v28 }
 0x426   : > { %v1255_v58 = vpop.permute.xlu1 %1254 }
 0x427   : > { %2184 = vmatprep.subr.bf16.mxu1 %v2183_v29 }
 0x428   : > { %2186 = vmatpush3.bf16.msra.mxu1 %v2183_v29 }
 0x42a   : > { %v1257_v59 = vpop.permute.xlu1 %1256 }
 0x42c   : > { %v2312_v30 = vpop.eup %2311 }
 0x42d   : > { %v1160_v31 = vsel %vm732_vm5, %v2312_v30, 0.0  ;;  %v2314_v32 = vpop.eup %2313 }
 0x42e   : > { %1161 = vadd.xlane.f32.xlu0 %v1160_v31  ;;  %v1157_v33 = vsel %vm732_vm5, %v2314_v32, 0.0 }
 0x432   : > { %1158 = vadd.xlane.f32.xlu0 %v1157_v33 }
 0x448   : > { %2288 = vrot.lane.b32.xlu0 %v2507_v41, %s2366_s17  ;;  %s2371_s17 = smov 8  }
 0x45b   : > { %v735_v62 = vpop.xlane.xlu1 %734 }
 0x45c   : > { %v739_v5 = vsub.f32 %v2574_v18, %v735_v62 }
 0x45e   : > { %v741_v48 = vmul.f32 1.442695, %v739_v5 }
 0x467   : > { %737 = vmax.xlane.f32.xlu0 %v736_v40 }
 0x46b   : > { %940 = vmax.xlane.f32.xlu0 %v939_v44 }
 0x46f   : > { %943 = vmax.xlane.f32.xlu0 %v942_v46 }
 0x4bb   : > { %v1162_v47 = vpop.xlane.xlu0 %1161 }
 0x4bc   : > { %2315 = vrcp.f32 %v1162_v47 }
 0x4bf   : > { %v1159_v49 = vpop.xlane.xlu0 %1158 }
 0x4c0   : > { %2317 = vrcp.f32 %v1159_v49 }
 0x4c3   : > { %v2289_v50 = vpop.permute.xlu0 %2288 }
 0x4c4   : > { %v2291_v51 = vunpack.i.h.bf16 %v2289_v50  ;;  %v2290_v52 = vunpack.i.l.bf16 %v2289_v50 }
 0x4c6   : > { %v2187_v53 = vpack.c.bf16 %v2291_v51, %v2290_v52  ;;  %v2316_v54 = vpop.eup %2315 }
 0x4c7   : > { %v1166_v57 = vmul.f32 %v2316_v54, %v2312_v30 }
 0x4c8   : > { %2189 = vmatprep.subr.msk.bf16.mxu1 %vm2518_vm2, %v2187_v53 }
 0x4ca   : > { %v2318_v55 = vpop.eup %2317 }
 0x4cb   : > { %v1165_v56 = vmul.f32 %v2318_v55, %v2314_v32 }
 0x4cd   : > { %2075 = vmatprep.mubr.msk.f32.mxu1 %vm732_vm5, %v1165_v56 }
 0x4ce   : > { %2076 = vmatmul.mubr.msk.f32.vlgmr.msra.gmra.mrb[8].mxu1 %vm732_vm5, %v1166_v57 }
 0x4cf   : > { %2192 = vmatpush3.bf16.xpose.msk.msra.mxu1 %vm2518_vm2, %v2187_v53  ;;  %2082 = vmatprep.mubr.msk.f32.mxu1 %vm636_vm1, %v1255_v58 }
 0x4d6   : > { %2083 = vmatmul.mubr.msk.f32.vlgmr.msra.gmra.mrb[10].mxu1 %vm636_vm1, %v1257_v59 }
 0x4f4   : > { %v738_v60 = vpop.xlane.xlu0 %737 }
 0x4f5   : > { %v740_v63 = vsub.f32 %v731_v37, %v738_v60 }
 0x4f7   : > { %v743_v8 = vmul.f32 1.442695, %v740_v63 }
 0x4f8   : > { %v941_v61 = vpop.xlane.xlu0 %940 }
 0x4f9   : > { %v945_v12 = vsub.f32 %v937_v42, %v941_v61  ;;  %2319 = vpow2.f32 %v743_v8 }
 0x4fa   : > { %2321 = vpow2.f32 %v741_v48 }
 0x4fb   : > { %v947_v14 = vmul.f32 1.442695, %v945_v12 }
 0x4fc   : > { %v944_v6 = vpop.xlane.xlu0 %943 }
 0x4fd   : > { %v946_v10 = vsub.f32 %v938_v45, %v944_v6 }
 0x4ff   : > { %v949_v13 = vmul.f32 1.442695, %v946_v10 }
 0x501   : > { %2323 = vpow2.f32 %v949_v13 }
 0x502   : > { %2325 = vpow2.f32 %v947_v14  ;;  %v1491_v14 = vld [vmem:[%s2769_s6] sm:$0xff] }
 0x503   : > { %v2320_v24 = vpop.eup %2319 }
 0x504   : > { %v2322_v26 = vpop.eup %2321  ;;  %v748_v27 = vsel %vm732_vm5, %v2320_v24, 0.0 }
 0x505   : > { %v745_v2 = vsel %vm732_vm5, %v2322_v26, 0.0 }
 0x50b   : > { %v2620_v3 = vpop.eup %2323 }
 0x50c   : > { %v2326_v4 = vpop.eup %2325 }
 0x50d   : > { %v951_v28 = vsel %vm732_vm5, %v2326_v4, 0.0 }
 0x5a1   : > { %v2605_v7 = vpop.f32.mrb[8].mxu1 }
 0x5a2   : > { %v2607_v11 = vpop.f32.mrb[9].mxu1 }
 0x5a9   : > { %v2084_v15 = vpop.f32.mrb[10].mxu1 }
 0x5aa   : > { %v1346_v16 = vmul.f32 0.35355338, %v2084_v15  ;;  %v1336_v17 = vpop.f32.mrb[11].mxu1  ;;  %v1492_v15 = vld [vmem:[%s2769_s6 + $0x8] sm:$0xff] }
 0x5ab   : > { %v1345_v19 = vmul.f32 0.35355338, %v1336_v17  ;;  %v1493_v17 = vld [vmem:[%s2769_s6 + $0x10] sm:$0xff] }
 0x5ac   : > { %v1348_v18 = vsel %vm628_vm3, %v1346_v16, -10000.0  ;;  %v2197_v16 = vpack.c.bf16 %v1492_v15, %v1491_v14 }
 0x5ad   : > { %v1347_v20 = vsel %vm627_vm4, %v1345_v19, -10000.0  ;;  %v1350_v21 = vadd.f32 %v2553_v9, %v1348_v18  ;;  %v1494_v19 = vld [vmem:[%s2769_s6 + $0x18] sm:$0xff] }
 0x5ae   : > { %v1349_v22 = vadd.f32 %v2553_v9, %v1347_v20  ;;  %v954_v9 = vsel %vm732_vm5, %v2620_v3, 0.0  ;;  %v2201_v18 = vpack.c.bf16 %v1494_v19, %v1493_v17  ;;  %v1742_v17 = vld [vmem:[%s2775_s12 + $0x18] sm:$0xff] }
 0x5af   : > { %v1354_v23 = vsel %vm732_vm5, %v1350_v21, -inf }
 0x5b0   : > { %1355 = vmax.xlane.f32.xlu0 %v1354_v23  ;;  %v1351_v25 = vsel %vm732_vm5, %v1349_v22, -inf }
 0x5b1   : > { %1352 = vmax.xlane.f32.xlu1 %v1351_v25 }
 0x5b4   : > { %749 = vadd.xlane.f32.xlu0 %v748_v27 }
 0x5b5   : > { %746 = vadd.xlane.f32.xlu1 %v745_v2 }
 0x5b8   : > { %955 = vadd.xlane.f32.xlu0 %v954_v9 }
 0x5b9   : > { %952 = vadd.xlane.f32.xlu1 %v951_v28 }
 0x5ca   : > { %2293 = vrot.lane.b32.xlu1 %v2507_v41, %s2367_s18  ;;  %s2372_s18 = smov 24  }
 0x63d   : > { %v1356_v29 = vpop.xlane.xlu0 %1355 }
 0x63e   : > { %v1358_v30 = vsub.f32 %v1350_v21, %v1356_v29  ;;  %v1353_v31 = vpop.xlane.xlu1 %1352 }
 0x63f   : > { %v1357_v32 = vsub.f32 %v1349_v22, %v1353_v31  ;;  %v1944_v31 = vld [vmem:[%s2770_s7] ss:$0 sm:$0xff] }
 0x640   : > { %v1361_v33 = vmul.f32 1.442695, %v1358_v30 }
 0x641   : > { %v1359_v34 = vmul.f32 1.442695, %v1357_v32  ;;  %v750_v35 = vpop.xlane.xlu0 %749 }
 0x642   : > { %2327 = vpow2.f32 %v1361_v33  ;;  %v747_v36 = vpop.xlane.xlu1 %746 }
 0x643   : > { %2329 = vpow2.f32 %v1359_v34 }
 0x644   : > { %2331 = vrcp.f32 %v750_v35 }
 0x645   : > { %2333 = vrcp.f32 %v747_v36  ;;  %v956_v54 = vpop.xlane.xlu0 %955 }
 0x646   : > { %v953_v37 = vpop.xlane.xlu1 %952 }
 0x647   : > { %2335 = vrcp.f32 %v953_v37 }
 0x648   : > { %2337 = vrcp.f32 %v956_v54  ;;  %v1632_v54 = vld [vmem:[%s2773_s10 + $0x18] sm:$0xff] }
 0x64a   : > { %v2294_v38 = vpop.permute.xlu1 %2293 }
 0x64b   : > { %v2296_v39 = vunpack.i.h.bf16 %v2294_v38  ;;  %v2295_v40 = vunpack.i.l.bf16 %v2294_v38 }
 0x64c   : > { %v2328_v42 = vpop.eup %2327 }
 0x64d   : > { %v2330_v43 = vpop.eup %2329  ;;  %v1366_v44 = vsel %vm732_vm5, %v2328_v42, 0.0  ;;  %v2163_v45 = vpack.c.bf16 %v2296_v39, %v2295_v40 }
 0x64e   : > { %v2332_v46 = vpop.eup %2331  ;;  %1367 = vadd.xlane.f32.xlu0 %v1366_v44  ;;  %v1363_v47 = vsel %vm732_vm5, %v2330_v43, 0.0 }
 0x64f   : > { %v2334_v49 = vpop.eup %2333  ;;  %1364 = vadd.xlane.f32.xlu1 %v1363_v47  ;;  %2164 = vmatprep.subr.bf16.mxu0 %v2163_v45  ;;  %v754_v52 = vmul.f32 %v2332_v46, %v2320_v24 }
 0x650   : > { %2166 = vmatpush3.bf16.msra.mxu0 %v2163_v45  ;;  %v753_v50 = vmul.f32 %v2334_v49, %v2322_v26 }
 0x651   : > { %v2336_v51 = vpop.eup %2335 }
 0x652   : > { %2047 = vmatprep.mubr.msk.f32.mxu0 %vm732_vm5, %v753_v50  ;;  %v959_v53 = vmul.f32 %v2336_v51, %v2326_v4  ;;  %v2338_v5 = vpop.eup %2337  ;;  %v1629_v50 = vld [vmem:[%s2773_s10] sm:$0xff]  ;;  %v1630_v51 = vld [vmem:[%s2773_s10 + $0x8] sm:$0xff] }
 0x653   : > { %2048 = vmatmul.mubr.msk.f32.vlgmr.msra.gmra.mrb[0].mxu0 %vm732_vm5, %v754_v52  ;;  %v960_v8 = vmul.f32 %v2338_v5, %v2620_v3  ;;  %v2205_v52 = vpack.c.bf16 %v1630_v51, %v1629_v50 }
 0x654   : > { %2061 = vmatprep.mubr.msk.f32.mxu0 %vm732_vm5, %v959_v53  ;;  %v1631_v53 = vld [vmem:[%s2773_s10 + $0x10] sm:$0xff] }
 0x655   : > { %2206 = vmatprep.subr.bf16.mxu1 %v2205_v52 }
 0x656   : > { %2208 = vmatpush3.bf16.msra.mxu1 %v2205_v52 }
 0x660   : > { %2303 = vrot.lane.b32.xlu1 %v2507_v41, %s2368_s19  ;;  %s481_s19 = scalar_lea.vmem %s2777_s14, %s1955_s15 }
 0x664   : > { %2298 = vrot.lane.b32.xlu0 %v2507_v41, %s2369_s20 }
 0x668   : > { %1470 = vrot.lane.b32.xlu0 %v2607_v11, %s2370_s21 }
 0x6db   : > { %v1368_v55 = vpop.xlane.xlu0 %1367 }
 0x6dc   : > { %2339 = vrcp.f32 %v1368_v55  ;;  %v1365_v56 = vpop.xlane.xlu1 %1364  ;;  %v2209_v55 = vpack.c.bf16 %v1632_v54, %v1631_v53 }
 0x6dd   : > { %2341 = vrcp.f32 %v1365_v56  ;;  %v1739_v56 = vld [vmem:[%s2775_s12] sm:$0xff] }
 0x6de   : > { %2210 = vmatprep.subr.bf16.mxu1 %v2209_v55 }
 0x6df   : > { %v2299_v57 = vpop.permute.xlu0 %2298  ;;  %2212 = vmatpush3.bf16.msra.mxu1 %v2209_v55 }
 0x6e0   : > { %v2301_v58 = vunpack.i.h.bf16 %v2299_v57  ;;  %v2300_v59 = vunpack.i.l.bf16 %v2299_v57  ;;  %v2304_v60 = vpop.permute.xlu1 %2303  ;;  %v1740_v57 = vld [vmem:[%s2775_s12 + $0x8] sm:$0xff] }
 0x6e1   : > { %v2306_v61 = vunpack.i.h.bf16 %v2304_v60  ;;  %v2305_v62 = vunpack.i.l.bf16 %v2304_v60 }
 0x6e2   : > { %v2173_v63 = vpack.c.bf16 %v2301_v58, %v2300_v59  ;;  %v2213_v58 = vpack.c.bf16 %v1740_v57, %v1739_v56  ;;  %v1952_v57 = vld [vmem:[%s2776_s13] ss:$0 sm:$0xff] }
 0x6e3   : > { %v2193_v6 = vpack.c.bf16 %v2306_v61, %v2305_v62  ;;  %v1471_v24 = vpop.permute.xlu0 %1470 }
 0x6e4   : > { %2174 = vmatprep.subr.bf16.mxu0 %v2173_v63 }
 0x6e5   : > { %2176 = vmatpush3.bf16.msra.mxu0 %v2173_v63 }
 0x6e6   : > { %v2340_v41 = vpop.eup %2339  ;;  %2194 = vmatprep.subr.bf16.mxu0 %v2193_v6 }
 0x6e7   : > { %v2342_v10 = vpop.eup %2341  ;;  %v1372_v48 = vmul.f32 %v2340_v41, %v2328_v42  ;;  %v1947_v41 = vld [vmem:[%s2771_s8] ss:$0 sm:$0xff] }
 0x6e8   : > { %2062 = vmatmul.mubr.msk.f32.vlgmr.msra.gmra.mrb[2].mxu0 %vm732_vm5, %v960_v8  ;;  %v1371_v11 = vmul.f32 %v2342_v10, %v2330_v43  ;;  %v1948_v10 = vld [vmem:[%s2772_s9] ss:$0 sm:$0xff] }
 0x6e9   : > { %2196 = vmatpush3.bf16.msra.mxu0 %v2193_v6 }
 0x6ea   : > { %2089 = vmatprep.mubr.msk.f32.mxu0 %vm732_vm5, %v1371_v11  ;;  %2198 = vmatprep.subr.bf16.mxu0 %v2197_v16 }
 0x6ec   : > { %2090 = vmatmul.mubr.msk.f32.vlgmr.msra.gmra.mrb[4].mxu0 %vm732_vm5, %v1372_v48 }
 0x6ed   : > { %2200 = vmatpush3.bf16.msra.mxu0 %v2197_v16  ;;  %v1741_v16 = vld [vmem:[%s2775_s12 + $0x10] sm:$0xff] }
 0x6ee   : > { %2202 = vmatprep.subr.bf16.mxu0 %v2201_v18  ;;  %v2217_v19 = vpack.c.bf16 %v1742_v17, %v1741_v16 }
 0x6f1   : > { %2204 = vmatpush3.bf16.msra.mxu0 %v2201_v18  ;;  %v1743_v18 = vld [vmem:[%s2775_s12 + $0x20] sm:$0xff] }
 0x6f2   : > { %2214 = vmatprep.subr.bf16.mxu0 %v2213_v58 }
 0x726   : > { %v2049_v12 = vpop.f32.mrb[0].mxu0 }
 0x727   : > { %v833_v13 = vpop.f32.mrb[1].mxu0 }
 0x7bb   : > { %v2063_v20 = vpop.f32.mrb[2].mxu0 }
 0x7bc   : > { %v1039_v21 = vpop.f32.mrb[3].mxu0 }
 0x7bd   : > { %1462 = vrot.lane.b32.xlu1 %v1039_v21, %s2371_s17 }
 0x7bf   : > { %v2091_v22 = vpop.f32.mrb[4].mxu0 }
 0x7c0   : > { %v1451_v23 = vpop.f32.mrb[5].mxu0 }
 0x7c1   : > { %1464 = vrot.lane.b32.xlu1 %v2063_v20, %s2371_s17  ;;  %1478 = vrot.lane.b32.xlu0 %v1451_v23, %s2372_s18  ;;  %v1744_v20 = vld [vmem:[%s2775_s12 + $0x28] sm:$0xff]  ;;  %v1746_v23 = vld [vmem:[%s2775_s12 + $0x38] sm:$0xff] }
 0x7c2   : > { %v2221_v21 = vpack.c.bf16 %v1744_v20, %v1743_v18 }
 0x7c5   : > { %1472 = vrot.lane.b32.xlu1 %v2605_v7, %s2370_s21 }
 0x7c9   : > { %1480 = vrot.lane.b32.xlu1 %v2091_v22, %s2372_s18  ;;  %v1745_v22 = vld [vmem:[%s2775_s12 + $0x30] sm:$0xff] }
 0x82f   : > { %v1463_v25 = vpop.permute.xlu1 %1462 }
 0x830   : > { %v1484_v26 = vsel %vm636_vm1, %v833_v13, %v1463_v25  ;;  %v1747_v25 = vld [vmem:[%s2775_s12 + $0x40] sm:$0xff] }
 0x831   : > { %v1486_v3 = vsel %vm732_vm5, %v1484_v26, %v1471_v24  ;;  %v2225_v24 = vpack.c.bf16 %v1746_v23, %v1745_v22  ;;  %v1748_v26 = vld [vmem:[%s2775_s12 + $0x48] sm:$0xff] }
 0x833   : > { %v1465_v27 = vpop.permute.xlu1 %1464  ;;  %v1479_v2 = vpop.permute.xlu0 %1478 }
 0x834   : > { %v1489_v4 = vsel %vm1488_vm6, %v1486_v3, %v1479_v2  ;;  %v1485_v28 = vsel %vm636_vm1, %v2049_v12, %v1465_v27  ;;  %v1749_v27 = vld [vmem:[%s2775_s12 + $0x50] sm:$0xff]  ;;  %v2229_v3 = vpack.c.bf16 %v1748_v26, %v1747_v25  ;;  %v1750_v2 = vld [vmem:[%s2775_s12 + $0x58] sm:$0xff] }
 0x835   : > { %2100 = vmatprep.mubr.msk.f32.mxu0 %vm486_vm0, %v1489_v4  ;;  %v2233_v4 = vpack.c.bf16 %v1750_v2, %v1749_v27 }
 0x837   : > { %v1473_v9 = vpop.permute.xlu1 %1472 }
 0x838   : > { %v1487_v29 = vsel %vm732_vm5, %v1485_v28, %v1473_v9  ;;  %v1751_v9 = vld [vmem:[%s2775_s12 + $0x60] sm:$0xff]  ;;  %v1752_v28 = vld [vmem:[%s2775_s12 + $0x68] sm:$0xff] }
 0x83b   : > { %v1481_v30 = vpop.permute.xlu1 %1480 }
 0x83c   : > { %v1490_v7 = vsel %vm1488_vm6, %v1487_v29, %v1481_v30  ;;  %v2237_v29 = vpack.c.bf16 %v1752_v28, %v1751_v9  ;;  %v1753_v30 = vld [vmem:[%s2775_s12 + $0x70] sm:$0xff] }
 0x83d   : > { %2101 = vmatmul.mubr.msk.f32.vlgmr.msra.gmra.mrb[6].mxu0 %vm486_vm0, %v1490_v7  ;;  %v1754_v7 = vld [vmem:[%s2775_s12 + $0x78] sm:$0xff] }
 0x83e   : > { %2216 = vmatpush3.bf16.msra.mxu0 %v2213_v58 }
 0x83f   : > { %2218 = vmatprep.subr.bf16.mxu0 %v2217_v19 }
 0x842   : > { %2220 = vmatpush3.bf16.msra.mxu0 %v2217_v19 }
 0x843   : > { %2222 = vmatprep.subr.bf16.mxu0 %v2221_v21 }
 0x846   : > { %2224 = vmatpush3.bf16.msra.mxu0 %v2221_v21 }
 0x847   : > { %2226 = vmatprep.subr.bf16.mxu0 %v2225_v24 }
 0x84a   : > { %2228 = vmatpush3.bf16.msra.mxu0 %v2225_v24 }
 0x84b   : > { %2230 = vmatprep.subr.bf16.mxu0 %v2229_v3 }
 0x84e   : > { %2232 = vmatpush3.bf16.msra.mxu0 %v2229_v3 }
 0x84f   : > { %2234 = vmatprep.subr.bf16.mxu0 %v2233_v4 }
 0x852   : > { %2236 = vmatpush3.bf16.msra.mxu0 %v2233_v4 }
 0x853   : > { %2238 = vmatprep.subr.bf16.mxu0 %v2237_v29 }
 0x856   : > { %2240 = vmatpush3.bf16.msra.mxu0 %v2237_v29 }
 0x910   : > { %v2102_v32 = vpop.f32.mrb[6].mxu0 }
 0x911   : > { %v1580_v33 = vadd.f32 %v2102_v32, %v1944_v31  ;;  %v1574_v34 = vpop.f32.mrb[7].mxu0  ;;  %v1949_v32 = vld [vmem:[%s2774_s11] ss:$0 sm:$0xff] }
 0x912   : > { %v1575_v35 = vadd.f32 %v1944_v31, %v1574_v34  ;;  %v2241_v31 = vpack.c.bf16 %v1754_v7, %v1753_v30 }
 0x913   : > { %v2664_v36 = vadd.f32 %v1580_v33, %v2466_v1 }
 0x914   : > { %v2667_v37 = vadd.f32 %v1575_v35, %v2464_v0  ;;  %2242 = vmatprep.subr.bf16.mxu0 %v2241_v31 }
 0x915   : > { %v1590_v38 = vsel %vm486_vm0, %v2664_v36, 0.0  ;;  %2244 = vmatpush3.bf16.msra.mxu0 %v2241_v31 }
 0x916   : > { %1591 = vadd.xlane.f32.xlu1 %v1590_v38  ;;  %v1587_v39 = vsel %vm486_vm0, %v2667_v37, 0.0 }
 0x917   : > { %1588 = vadd.xlane.f32.xlu0 %v1587_v39 }
 0x9a3   : > { %v1592_v40 = vpop.xlane.xlu1 %1591 }
 0x9a4   : > { %v1594_v42 = vmul.f32 0.03125, %v1592_v40  ;;  %v1589_v43 = vpop.xlane.xlu0 %1588 }
 0x9a5   : > { %v1593_v44 = vmul.f32 0.03125, %v1589_v43 }
 0x9a6   : > { %v1596_v45 = vsub.f32 %v2664_v36, %v1594_v42 }
 0x9a7   : > { %v1595_v1 = vsub.f32 %v2667_v37, %v1593_v44 }
 0x9a8   : > { %v1598_v47 = vmul.f32 %v1596_v45, %v1596_v45 }
 0x9a9   : > { %v1597_v46 = vmul.f32 %v1595_v1, %v1595_v1 }
 0x9aa   : > { %v1602_v49 = vsel %vm486_vm0, %v1598_v47, 0.0 }
 0x9ab   : > { %v1599_v0 = vsel %vm486_vm0, %v1597_v46, 0.0 }
 0x9ac   : > { %1600 = vadd.xlane.f32.xlu0 %v1599_v0 }
 0x9b0   : > { %1603 = vadd.xlane.f32.xlu0 %v1602_v49 }
 0xa39   : > { %v1601_v59 = vpop.xlane.xlu0 %1600 }
 0xa3a   : > { %v1605_v60 = vmul.f32 0.03125, %v1601_v59 }
 0xa3c   : > { %v1607_v61 = vadd.f32 1e-05, %v1605_v60 }
 0xa3d   : > { %v1604_v62 = vpop.xlane.xlu0 %1603 }
 0xa3e   : > { %2343 = vrsqrt.f32 %v1607_v61  ;;  %v1606_v63 = vmul.f32 0.03125, %v1604_v62 }
 0xa40   : > { %v1608_v5 = vadd.f32 1e-05, %v1606_v63 }
 0xa42   : > { %2345 = vrsqrt.f32 %v1608_v5 }
 0xa48   : > { %v2344_v6 = vpop.eup %2343 }
 0xa49   : > { %v1611_v8 = vmul.f32 %v2344_v6, %v1595_v1 }
 0xa4b   : > { %v1619_v11 = vmul.f32 %v1947_v41, %v1611_v8 }
 0xa4c   : > { %v2346_v48 = vpop.eup %2345 }
 0xa4d   : > { %v1612_v12 = vmul.f32 %v2346_v48, %v1596_v45  ;;  %v1627_v13 = vadd.f32 %v1948_v10, %v1619_v11 }
 0xa4f   : > { %v1620_v14 = vmul.f32 %v1947_v41, %v1612_v12  ;;  %2111 = vmatprep.mubr.msk.f32.mxu1 %vm486_vm0, %v1627_v13 }
 0xa51   : > { %v1628_v15 = vadd.f32 %v1948_v10, %v1620_v14 }
 0xa53   : > { %2112 = vmatmul.mubr.msk.f32.vlgmr.msra.gmra.mrb[12].mxu1 %vm486_vm0, %v1628_v15 }
 0xb26   : > { %v2113_v33 = vpop.f32.mrb[12].mxu1 }
 0xb27   : > { %v1718_v34 = vadd.f32 %v2113_v33, %v1949_v32  ;;  %v1712_v35 = vpop.f32.mrb[13].mxu1 }
 0xb28   : > { %v1713_v38 = vadd.f32 %v1949_v32, %v1712_v35 }
 0xb29   : > { %v1724_v39 = vmul.f32 %v1718_v34, %v1718_v34  ;;  %v1722_v54 = vmul.f32 0.5, %v1718_v34 }
 0xb2a   : > { %v1723_v40 = vmul.f32 %v1713_v38, %v1713_v38  ;;  %v1721_v52 = vmul.f32 0.5, %v1713_v38 }
 0xb2b   : > { %v1726_v42 = vmul.f32 %v1724_v39, %v1718_v34 }
 0xb2c   : > { %v1725_v43 = vmul.f32 %v1723_v40, %v1713_v38 }
 0xb2d   : > { %v1728_v44 = vmul.f32 0.044715, %v1726_v42 }
 0xb2e   : > { %v1727_v45 = vmul.f32 0.044715, %v1725_v43 }
 0xb2f   : > { %v1730_v1 = vadd.f32 %v1728_v44, %v1718_v34 }
 0xb30   : > { %v1729_v46 = vadd.f32 %v1727_v45, %v1713_v38 }
 0xb31   : > { %v1732_v0 = vmul.f32 0.7978846, %v1730_v1 }
 0xb32   : > { %v1731_v47 = vmul.f32 0.7978846, %v1729_v46 }
 0xb33   : > { %2347 = vtanh.f32 %v1732_v0 }
 0xb34   : > { %2349 = vtanh.f32 %v1731_v47 }
 0xb3d   : > { %v2348_v49 = vpop.eup %2347 }
 0xb3e   : > { %v2350_v50 = vpop.eup %2349  ;;  %v1736_v51 = vadd.f32 1.0, %v2348_v49 }
 0xb3f   : > { %v1735_v53 = vadd.f32 1.0, %v2350_v50 }
 0xb40   : > { %v1738_v56 = vmul.f32 %v1736_v51, %v1722_v54 }
 0xb41   : > { %v1737_v55 = vmul.f32 %v1735_v53, %v1721_v52 }
 0xb43   : > { %2146 = vmatprep.mubr.f32.mxu0 %v1737_v55 }
 0xb44   : > { %2147 = vmatmul.mubr.f32.vlgmr.msra.gmra.mrb[8].mxu0 %v1738_v56 }
 0xc17   : > { %v2148_v58 = vpop.f32.mrb[8].mxu0 }
 0xc18   : > { %v1834_v59 = vadd.f32 %v2148_v58, %v1952_v57  ;;  %v1828_v60 = vpop.f32.mrb[9].mxu0 }
 0xc19   : > { %v1829_v61 = vadd.f32 %v1952_v57, %v1828_v60 }
 0xc1a   : > { %v1838_v62 = vadd.f32 %v1834_v59, %v2664_v36 }
 0xc1b   : > { %v1837_v63 = vadd.f32 %v1829_v61, %v2667_v37 }
 0xc1c   : > { %1840 = vst.msk [vmem:[%s481_s19 + $0x8] sm:$0xff] %vm486_vm0, %v1838_v62 }
 0xc1d   : > { %1839 = vst.msk [vmem:[%s481_s19] sm:$0xff] %vm486_vm0, %v1837_v63 }
 0xc1e PF: > { %s24_s29 = sadd.s32 1, %s2357_s29  }
 0xc1f   : > { %p21_p4 = scmp.ge.s32.totalorder %s24_s29, 4  }
 0xc21   :  { %23 = sbr.rel (!%p21_p4) target bundleno = 1 (0x1), region = 109 }

// kernel: dpks_forward.10
= control target key start
LH: loop header
LB: loop body
LE: loop exit
PB: predicated region body
PF: predicated region fallthrough
CT: control target
= control target key end

     0   :  { %s2048_s29 = smov 0   ;;  %s2291_s0 = inlined_call_operand.vmem [shape: f32[2,4,32], index: 0, kind: input, shape index: {}]   ;;  %s2292_s1 = inlined_call_operand.vmem [shape: f32[2,1,4], index: 1, kind: input, shape index: {}]   ;;  %s2293_s2 = inlined_call_operand.vmem [shape: f32[1,32], index: 2, kind: input, shape index: {}]   ;;  %s2294_s3 = inlined_call_operand.vmem [shape: f32[1,32], index: 3, kind: input, shape index: {}]   ;;  %s2295_s4 = inlined_call_operand.vmem [shape: f32[32,96], index: 4, kind: input, shape index: {}]   ;;  %s2296_s5 = inlined_call_operand.vmem [shape: f32[1,96], index: 5, kind: input, shape index: {}]   ;;  %s2297_s6 = inlined_call_operand.vmem [shape: f32[32,32], index: 6, kind: input, shape index: {}]   ;;  %s2298_s7 = inlined_call_operand.vmem [shape: f32[1,32], index: 7, kind: input, shape index: {}]   ;;  %s2299_s8 = inlined_call_operand.vmem [shape: f32[1,32], index: 8, kind: input, shape index: {}]   ;;  %s2300_s9 = inlined_call_operand.vmem [shape: f32[1,32], index: 9, kind: input, shape index: {}]   ;;  %s2301_s10 = inlined_call_operand.vmem [shape: f32[32,128], index: 10, kind: input, shape index: {}]   ;;  %s2302_s11 = inlined_call_operand.vmem [shape: f32[1,128], index: 11, kind: input, shape index: {}]   ;;  %s2303_s12 = inlined_call_operand.vmem [shape: f32[128,32], index: 12, kind: input, shape index: {}]   ;;  %s2304_s13 = inlined_call_operand.vmem [shape: f32[1,32], index: 13, kind: input, shape index: {}]   ;;  %s2305_s14 = inlined_call_operand.vmem [shape: f32[2,4,32], index: 14, kind: output, shape index: {}]  }
   0x1 LB: > { %s1666_s30 = sadd.s32 4294967295, %s1954_s29   ;;  %p1670_p0 = scmp.ge.s32.totalorder %s1954_s29, 1  ;;  %s1954_s29 = sphi %s2048_s29, %s24_s29  }
   0x2   : > { %p419_p1 = scmp.lt.s32.totalorder %s1954_s29, 3 }
   0x4   : > { %p420_p2 = pnand %p1670_p0, %p419_p1 }
   0x5   : > { %p466_p3 = scmp.lt.s32.totalorder (!%p420_p2), %s1666_s30, 1  ;;  %vm480_vm0 = vcmask (!%p420_p2), 257024   ;;  %v509_v7 = vld [vmem:[%s2295_s4] sm:$0xff] (!%p420_p2)  ;;  %v510_v8 = vld [vmem:[%s2295_s4 + $0x8] sm:$0xff] (!%p420_p2)  ;;  %v511_v9 = vld [vmem:[%s2295_s4 + $0x10] sm:$0xff] (!%p420_p2)  ;;  %v1956_v10 = vmov (!%p420_p2), 0.0|0.0   ;;  %v594_v35 = vlaneseq (!%p420_p2) }
   0x6   : > { %423 = sbr.rel (%p420_p2) target bundleno = 2523 (0x9db), region = 76  ;;  %1859 = vmatprep.subr.bf16.mxu1 (!%p420_p2), %v1956_v10  ;;  %v1860_v11 = vpack.c.bf16 (!%p420_p2), %v510_v8, %v509_v7  ;;  %v512_v12 = vld [vmem:[%s2295_s4 + $0x18] sm:$0xff] (!%p420_p2)  ;;  %vm1957_vm1 = vmmov (!%p420_p2), 0   ;;  %v1958_v13 = vmov (!%p420_p2), 0.0   ;;  %v1673_v19 = vld [vmem:[%s2293_s2] ss:$0 sm:$0xff] (!%p420_p2) }
   0x7   : > { %1759 = vmatprep.mubr.msk.f32.mxu1 (!%p420_p2), %vm1957_vm1, %v1958_v13  ;;  %1772 = vmatprep.subr.mxu0 (!%p420_p2), %v1958_v13  ;;  %v1863_v14 = vpack.c.bf16 (!%p420_p2), %v512_v12, %v511_v9  ;;  %v1674_v21 = vld [vmem:[%s2294_s3] ss:$0 sm:$0xff] (!%p420_p2)  ;;  %vm520_vm2 = vcmask (!%p420_p2), 261120   ;;  %s1959_s20 = smov (!%p420_p2), 120   ;;  %s1960_s21 = smov (!%p420_p2), 96   ;;  %vm603_vm3 = vcmask (!%p420_p2), 64512  }
   0x8   : > { %1774 = vmatprep.mubr.msk.f32.mxu0 (!%p420_p2), %vm1957_vm1, %v1958_v13  ;;  %1861 = vmatpush3.bf16.msra.mxu1 (!%p420_p2), %v1860_v11  ;;  %v1675_v24 = vld [vmem:[%s2296_s5] ss:$0 sm:$0xff] (!%p420_p2)  ;;  %s1961_s22 = smov (!%p420_p2), 88   ;;  %s1962_s23 = smov (!%p420_p2), 80   ;;  %v595_v36 = vshrl.u32 (!%p420_p2), %v594_v35, 7  ;;  %v597_v37 = vand.u32 (!%p420_p2), 127, %v594_v35 }
   0x9   : > { %1862 = vmatprep.subr.bf16.mxu1 (!%p420_p2), %v1956_v10  ;;  %s1963_s24 = smov (!%p420_p2), 112   ;;  %s1964_s25 = smov (!%p420_p2), 72   ;;  %vm687_vm5 = vcmask (!%p420_p2), 27648   ;;  %vm705_vm6 = vcmask (!%p420_p2), 1043456   ;;  %vm701_vm7 = vcmask (!%p420_p2), 31744   ;;  %vm1298_vm8 = vcmask (!%p420_p2), 130048  }
   0xa   : > { %s1965_s26 = smov (!%p420_p2), 104   ;;  %vm598_vm4 = vcmp.le.s32.totalorder (!%p420_p2), %v597_v37, %v595_v36  ;;  %s1966_s17 = smov (!%p420_p2), 64   ;;  %vm1300_vm9 = vcmask (!%p420_p2), 195584  }
   0xb   : > { %s1968_s19 = smov (!%p420_p2), 40  }
   0xc   : > { %1864 = vmatpush3.bf16.msra.mxu1 (!%p420_p2), %v1863_v14 }
   0xd   : > { %s2307_s30 = smov (!%p466_p3, %s1666_s30), 1  ;;  %1762 = vmatprep.subr.mxu1 %v1958_v13 }
   0xe   : > { %s1671_s15 = sshll.u32 %s2307_s30, 2  ;;  %s472_s16 = scalar_lea.vmem %s2292_s1, %s2307_s30 }
   0xf   : > { %s469_s18 = scalar_lea.vmem %s2291_s0, %s1671_s15  ;;  %v1679_v41 = vld [vmem:[%s472_s16] ss:$0 sm:$0xff]  ;;  %s1970_s16 = smov 8  }
  0x10   : > { %v2064_v0 = vld [vmem:[%s469_s18] sm:$0xf]  ;;  %s1967_s18 = smov 48  }
  0x11   : > { %v481_v1 = vsel %vm480_vm0, %v2064_v0, 0.0 }
  0x12   : > { %482 = vadd.xlane.f32.xlu0 %v481_v1 }
  0x9f   : > { %v483_v2 = vpop.xlane.xlu0 %482 }
  0xa0   : > { %v485_v3 = vmul.f32 0.03125, %v483_v2 }
  0xa2   : > { %v486_v4 = vsub.f32 %v2064_v0, %v485_v3 }
  0xa4   : > { %v487_v5 = vmul.f32 %v486_v4, %v486_v4 }
  0xa6   : > { %v488_v6 = vsel %vm480_vm0, %v487_v5, 0.0 }
  0xa7   : > { %489 = vadd.xlane.f32.xlu0 %v488_v6 }
 0x134   : > { %v490_v15 = vpop.xlane.xlu0 %489 }
 0x135   : > { %v491_v16 = vmul.f32 0.03125, %v490_v15 }
 0x137   : > { %v492_v17 = vadd.f32 1e-05, %v491_v16 }
 0x139   : > { %1926 = vrsqrt.f32 %v492_v17 }
 0x143   : > { %v1927_v18 = vpop.eup %1926 }
 0x144   : > { %v494_v20 = vmul.f32 %v1927_v18, %v486_v4 }
 0x146   : > { %v501_v22 = vmul.f32 %v1673_v19, %v494_v20 }
 0x148   : > { %v508_v23 = vadd.f32 %v1674_v21, %v501_v22 }
 0x14a   : > { %1760 = vmatmul.mubr.msk.f32.vlgmr.msra.gmra.mrb[0].mxu1 %vm520_vm2, %v508_v23 }
 0x14b   : > { %1764 = vmatprep.mubr.msk.f32.mxu1 %vm1957_vm1, %v1958_v13 }
 0x21d   : > { %v590_v25 = vpop.f32.mrb[0].mxu1 }
 0x21e   : > { %v2102_v26 = vadd.f32 %v1675_v24, %v590_v25  ;;  %v1761_v27 = vpop.f32.mrb[1].mxu1 }
 0x220   : > { %778 = vrot.lane.b32.xlu0 %v2102_v26, %s1959_s20  ;;  %601 = vrot.lane.b32.xlu1 %v2102_v26, %s1960_s21  ;;  %s1969_s20 = smov 56  }
 0x224   : > { %780 = vrot.lane.b32.xlu1 %v2102_v26, %s1961_s22 }
 0x228   : > { %949 = vrot.lane.b32.xlu1 %v2102_v26, %s1962_s23 }
 0x22c   : > { %947 = vrot.lane.b32.xlu1 %v2102_v26, %s1963_s24 }
 0x230   : > { %1118 = vrot.lane.b32.xlu1 %v2102_v26, %s1964_s25 }
 0x234   : > { %1116 = vrot.lane.b32.xlu1 %v2102_v26, %s1965_s26 }
 0x292   : > { %v602_v28 = vpop.permute.xlu1 %601  ;;  %v779_v30 = vpop.permute.xlu0 %778 }
 0x293   : > { %1763 = vmatpush3.xpose.msk.msra.mxu1 %vm603_vm3, %v602_v28 }
 0x294   : > { %1767 = vmatprep.subr.mxu1 %v1958_v13 }
 0x296   : > { %1765 = vmatmul.mubr.msk.f32.vlgmr.msra.gmra.mrb[2].mxu1 %vm603_vm3, %v2102_v26  ;;  %v781_v29 = vpop.permute.xlu1 %780 }
 0x297   : > { %1773 = vmatpush3.xpose.msk.msra.mxu0 %vm603_vm3, %v781_v29  ;;  %1769 = vmatprep.mubr.msk.f32.mxu1 %vm1957_vm1, %v1958_v13 }
 0x298   : > { %1782 = vmatprep.subr.mxu0 %v1958_v13 }
 0x29a   : > { %1775 = vmatmul.mubr.msk.f32.vlgmr.msra.gmra.mrb[0].mxu0 %vm603_vm3, %v779_v30  ;;  %v950_v31 = vpop.permute.xlu1 %949 }
 0x29b   : > { %1783 = vmatpush3.xpose.msk.msra.mxu0 %vm603_vm3, %v950_v31  ;;  %1784 = vmatprep.mubr.msk.f32.mxu0 %vm1957_vm1, %v1958_v13 }
 0x29c   : > { %1792 = vmatprep.subr.mxu0 %v1958_v13 }
 0x29e   : > { %v948_v32 = vpop.permute.xlu1 %947 }
 0x29f   : > { %1785 = vmatmul.mubr.msk.f32.vlgmr.msra.gmra.mrb[2].mxu0 %vm603_vm3, %v948_v32 }
 0x2a0   : > { %1794 = vmatprep.mubr.msk.f32.mxu0 %vm1957_vm1, %v1958_v13 }
 0x2a2   : > { %v1119_v33 = vpop.permute.xlu1 %1118 }
 0x2a3   : > { %1793 = vmatpush3.xpose.msk.msra.mxu0 %vm603_vm3, %v1119_v33 }
 0x2a4   : > { %1877 = vmatprep.subr.bf16.mxu0 %v1956_v10 }
 0x2a6   : > { %v1117_v34 = vpop.permute.xlu1 %1116 }
 0x2a7   : > { %1795 = vmatmul.mubr.msk.f32.vlgmr.msra.gmra.mrb[4].mxu0 %vm603_vm3, %v1117_v34 }
 0x2a8   : > { %1856 = vmatprep.mubr.msk.f32.mxu0 %vm1957_vm1, %v1958_v13 }
 0x369   : > { %v674_v38 = vpop.f32.mrb[2].mxu1 }
 0x36a   : > { %v678_v39 = vmul.f32 0.35355338, %v674_v38  ;;  %v1766_v40 = vpop.f32.mrb[3].mxu1  ;;  %v1302_v38 = vld [vmem:[%s2297_s6] sm:$0xff] }
 0x36c   : > { %v679_v42 = vsel %vm598_vm4, %v678_v39, -10000.0  ;;  %v1303_v39 = vld [vmem:[%s2297_s6 + $0x8] sm:$0xff] }
 0x36d   : > { %v852_v43 = vpop.f32.mrb[0].mxu0  ;;  %v686_v44 = vadd.f32 %v1679_v41, %v679_v42  ;;  %v1866_v40 = vpack.c.bf16 %v1303_v39, %v1302_v38  ;;  %v1521_v39 = vld [vmem:[%s2303_s12 + $0x60] sm:$0xff] }
 0x36e   : > { %v856_v45 = vmul.f32 0.35355338, %v852_v43  ;;  %v1776_v46 = vpop.f32.mrb[1].mxu0  ;;  %v1304_v43 = vld [vmem:[%s2297_s6 + $0x10] sm:$0xff] }
 0x36f   : > { %v688_v47 = vsel %vm687_vm5, %v686_v44, -inf }
 0x370   : > { %v857_v48 = vsel %vm598_vm4, %v856_v45, -10000.0  ;;  %689 = vmax.xlane.f32.xlu1 %v688_v47 }
 0x371   : > { %v858_v49 = vadd.f32 %v1679_v41, %v857_v48 }
 0x372   : > { %v1021_v50 = vpop.f32.mrb[2].mxu0 }
 0x373   : > { %v1025_v51 = vmul.f32 0.35355338, %v1021_v50  ;;  %v1786_v52 = vpop.f32.mrb[3].mxu0  ;;  %v859_v53 = vsel %vm687_vm5, %v858_v49, -inf }
 0x374   : > { %860 = vmax.xlane.f32.xlu0 %v859_v53 }
 0x375   : > { %v1026_v54 = vsel %vm598_vm4, %v1025_v51, -10000.0 }
 0x376   : > { %v1027_v55 = vadd.f32 %v1679_v41, %v1026_v54 }
 0x378   : > { %v1028_v56 = vsel %vm687_vm5, %v1027_v55, -inf }
 0x379   : > { %1029 = vmax.xlane.f32.xlu1 %v1028_v56 }
 0x37a   : > { %v1190_v57 = vpop.f32.mrb[4].mxu0 }
 0x37b   : > { %v1194_v58 = vmul.f32 0.35355338, %v1190_v57  ;;  %v1796_v59 = vpop.f32.mrb[5].mxu0 }
 0x37d   : > { %v1195_v60 = vsel %vm598_vm4, %v1194_v58, -10000.0  ;;  %v1694_v58 = vld [vmem:[%s2298_s7] ss:$0 sm:$0xff] }
 0x37e   : > { %v1196_v61 = vadd.f32 %v1679_v41, %v1195_v60 }
 0x380   : > { %v1197_v62 = vsel %vm687_vm5, %v1196_v61, -inf }
 0x381   : > { %1198 = vmax.xlane.f32.xlu0 %v1197_v62 }
 0x38a   : > { %699 = vrot.lane.b32.xlu1 %v2102_v26, %s1966_s17  ;;  %s1971_s17 = smov 16  }
 0x3fd   : > { %v690_v63 = vpop.xlane.xlu1 %689 }
 0x3fe   : > { %v691_v1 = vsub.f32 %v686_v44, %v690_v63  ;;  %v1305_v44 = vld [vmem:[%s2297_s6 + $0x18] sm:$0xff] }
 0x3ff   : > { %v1869_v45 = vpack.c.bf16 %v1305_v44, %v1304_v43  ;;  %v1524_v43 = vld [vmem:[%s2303_s12 + $0x78] sm:$0xff] }
 0x400   : > { %v692_v2 = vmul.f32 1.442695, %v691_v1 }
 0x401   : > { %v861_v3 = vpop.xlane.xlu0 %860 }
 0x402   : > { %1928 = vpow2.f32 %v692_v2  ;;  %v862_v4 = vsub.f32 %v858_v49, %v861_v3 }
 0x404   : > { %v863_v5 = vmul.f32 1.442695, %v862_v4 }
 0x406   : > { %1930 = vpow2.f32 %v863_v5  ;;  %v1030_v6 = vpop.xlane.xlu1 %1029  ;;  %v1416_v5 = vld [vmem:[%s2301_s10] sm:$0xff] }
 0x407   : > { %v1031_v7 = vsub.f32 %v1027_v55, %v1030_v6 }
 0x409   : > { %v1032_v8 = vmul.f32 1.442695, %v1031_v7  ;;  %v1418_v7 = vld [vmem:[%s2301_s10 + $0x10] sm:$0xff] }
 0x40a   : > { %v700_v9 = vpop.permute.xlu1 %699 }
 0x40b   : > { %1932 = vpow2.f32 %v1032_v8  ;;  %1768 = vmatpush3.msk.msra.mxu1 %vm705_vm6, %v700_v9  ;;  %v1419_v8 = vld [vmem:[%s2301_s10 + $0x18] sm:$0xff] }
 0x40c   : > { %v1929_v11 = vpop.eup %1928  ;;  %1777 = vmatprep.subr.mxu1 %v1958_v13  ;;  %v1875_v9 = vpack.c.bf16 %v1419_v8, %v1418_v7 }
 0x40d   : > { %v694_v12 = vsel %vm687_vm5, %v1929_v11, 0.0 }
 0x40e   : > { %v1199_v14 = vpop.xlane.xlu0 %1198  ;;  %695 = vadd.xlane.f32.xlu1 %v694_v12  ;;  %v1510_v12 = vld [vmem:[%s2303_s12 + $0x8] sm:$0xff] }
 0x40f   : > { %v1200_v15 = vsub.f32 %v1196_v61, %v1199_v14 }
 0x410   : > { %v1931_v16 = vpop.eup %1930 }
 0x411   : > { %v1201_v17 = vmul.f32 1.442695, %v1200_v15  ;;  %v865_v18 = vsel %vm687_vm5, %v1931_v16, 0.0 }
 0x412   : > { %866 = vadd.xlane.f32.xlu0 %v865_v18 }
 0x413   : > { %1934 = vpow2.f32 %v1201_v17 }
 0x415   : > { %v1933_v19 = vpop.eup %1932 }
 0x416   : > { %v1034_v20 = vsel %vm687_vm5, %v1933_v19, 0.0 }
 0x417   : > { %1035 = vadd.xlane.f32.xlu1 %v1034_v20 }
 0x41d   : > { %v1935_v21 = vpop.eup %1934 }
 0x41e   : > { %v1203_v22 = vsel %vm687_vm5, %v1935_v21, 0.0 }
 0x41f   : > { %1204 = vadd.xlane.f32.xlu0 %v1203_v22 }
 0x428   : > { %1039 = vrot.lane.b32.xlu1 %v2102_v26, %s1967_s18  ;;  %s1972_s18 = smov 24  }
 0x42c   : > { %1208 = vrot.lane.b32.xlu1 %v2102_v26, %s1968_s19  ;;  %s476_s19 = scalar_lea.vmem %s2305_s14, %s1671_s15 }
 0x435   : > { %870 = vrot.lane.b32.xlu0 %v2102_v26, %s1969_s20 }
 0x49b   : > { %v696_v23 = vpop.xlane.xlu1 %695 }
 0x49c   : > { %1936 = vrcp.f32 %v696_v23 }
 0x49f   : > { %v867_v24 = vpop.xlane.xlu0 %866 }
 0x4a0   : > { %1938 = vrcp.f32 %v867_v24  ;;  %v1511_v24 = vld [vmem:[%s2303_s12 + $0x10] sm:$0xff] }
 0x4a4   : > { %v1036_v25 = vpop.xlane.xlu1 %1035 }
 0x4a5   : > { %1940 = vrcp.f32 %v1036_v25  ;;  %v1512_v25 = vld [vmem:[%s2303_s12 + $0x18] sm:$0xff] }
 0x4a6   : > { %v1937_v27 = vpop.eup %1936 }
 0x4a7   : > { %v698_v28 = vmul.f32 %v1937_v27, %v1929_v11  ;;  %v1509_v11 = vld [vmem:[%s2303_s12] sm:$0xff]  ;;  %v1881_v27 = vpack.c.bf16 %v1512_v25, %v1511_v24 }
 0x4a8   : > { %v1040_v32 = vpop.permute.xlu1 %1039  ;;  %v1878_v14 = vpack.c.bf16 %v1510_v12, %v1509_v11 }
 0x4a9   : > { %1770 = vmatmul.mubr.msk.f32.vlgmr.msra.gmra.mrb[4].mxu1 %vm701_vm7, %v698_v28  ;;  %v1513_v28 = vld [vmem:[%s2303_s12 + $0x20] sm:$0xff] }
 0x4aa   : > { %1779 = vmatprep.mubr.msk.f32.mxu1 %vm1957_vm1, %v1958_v13  ;;  %v1939_v30 = vpop.eup %1938  ;;  %1879 = vmatpush3.bf16.msra.mxu0 %v1878_v14 }
 0x4ab   : > { %v869_v31 = vmul.f32 %v1939_v30, %v1931_v16  ;;  %1880 = vmatprep.subr.bf16.mxu0 %v1956_v10 }
 0x4ac   : > { %v1205_v29 = vpop.xlane.xlu0 %1204  ;;  %v1209_v35 = vpop.permute.xlu1 %1208 }
 0x4ad   : > { %1942 = vrcp.f32 %v1205_v29  ;;  %v1514_v29 = vld [vmem:[%s2303_s12 + $0x28] sm:$0xff] }
 0x4ae   : > { %1882 = vmatpush3.bf16.msra.mxu0 %v1881_v27  ;;  %v1884_v30 = vpack.c.bf16 %v1514_v29, %v1513_v28 }
 0x4af   : > { %v1941_v33 = vpop.eup %1940  ;;  %1883 = vmatprep.subr.bf16.mxu0 %v1956_v10 }
 0x4b0   : > { %v871_v26 = vpop.permute.xlu0 %870  ;;  %v1038_v34 = vmul.f32 %v1941_v33, %v1933_v19  ;;  %v1696_v19 = vld [vmem:[%s2299_s8] ss:$0 sm:$0xff] }
 0x4b1   : > { %1778 = vmatpush3.msk.msra.mxu1 %vm705_vm6, %v871_v26  ;;  %v1517_v33 = vld [vmem:[%s2303_s12 + $0x40] sm:$0xff] }
 0x4b2   : > { %1780 = vmatmul.mubr.msk.f32.vlgmr.msra.gmra.mrb[6].mxu1 %vm701_vm7, %v869_v31  ;;  %1787 = vmatprep.subr.mxu1 %v1958_v13  ;;  %v1515_v31 = vld [vmem:[%s2303_s12 + $0x30] sm:$0xff] }
 0x4b3   : > { %1788 = vmatpush3.msk.msra.mxu1 %vm705_vm6, %v1040_v32  ;;  %1789 = vmatprep.mubr.msk.f32.mxu1 %vm1957_vm1, %v1958_v13  ;;  %v1516_v32 = vld [vmem:[%s2303_s12 + $0x38] sm:$0xff] }
 0x4b4   : > { %1797 = vmatprep.subr.mxu1 %v1958_v13  ;;  %1885 = vmatpush3.bf16.msra.mxu0 %v1884_v30  ;;  %v1887_v26 = vpack.c.bf16 %v1516_v32, %v1515_v31 }
 0x4b5   : > { %1886 = vmatprep.subr.bf16.mxu0 %v1956_v10 }
 0x4b6   : > { %1790 = vmatmul.mubr.msk.f32.vlgmr.msra.gmra.mrb[8].mxu1 %vm701_vm7, %v1038_v34  ;;  %v1518_v34 = vld [vmem:[%s2303_s12 + $0x48] sm:$0xff] }
 0x4b7   : > { %v1943_v36 = vpop.eup %1942  ;;  %1798 = vmatpush3.msk.msra.mxu1 %vm705_vm6, %v1209_v35  ;;  %1799 = vmatprep.mubr.msk.f32.mxu1 %vm1957_vm1, %v1958_v13  ;;  %v1890_v35 = vpack.c.bf16 %v1518_v34, %v1517_v33 }
 0x4b8   : > { %v1207_v37 = vmul.f32 %v1943_v36, %v1935_v21  ;;  %1865 = vmatprep.subr.bf16.mxu1 %v1956_v10  ;;  %v1697_v21 = vld [vmem:[%s2300_s9] ss:$0 sm:$0xff]  ;;  %1888 = vmatpush3.bf16.msra.mxu0 %v1887_v26  ;;  %v1519_v36 = vld [vmem:[%s2303_s12 + $0x50] sm:$0xff] }
 0x4b9   : > { %1889 = vmatprep.subr.bf16.mxu0 %v1956_v10 }
 0x4ba   : > { %1800 = vmatmul.mubr.msk.f32.vlgmr.msra.gmra.mrb[10].mxu1 %vm701_vm7, %v1207_v37  ;;  %v1520_v37 = vld [vmem:[%s2303_s12 + $0x58] sm:$0xff] }
 0x4bb   : > { %1810 = vmatprep.mubr.msk.f32.mxu1 %vm1957_vm1, %v1958_v13  ;;  %1867 = vmatpush3.bf16.msra.mxu1 %v1866_v40  ;;  %v1893_v38 = vpack.c.bf16 %v1520_v37, %v1519_v36  ;;  %v1522_v40 = vld [vmem:[%s2303_s12 + $0x68] sm:$0xff] }
 0x4bc   : > { %1868 = vmatprep.subr.bf16.mxu1 %v1956_v10  ;;  %1891 = vmatpush3.bf16.msra.mxu0 %v1890_v35 }
 0x4bd   : > { %1892 = vmatprep.subr.bf16.mxu0 %v1956_v10 }
 0x4bf   : > { %1870 = vmatpush3.bf16.msra.mxu1 %v1869_v45  ;;  %v1698_v45 = vld [vmem:[%s2302_s11] ss:$0 sm:$0xff] }
 0x4c0   : > { %1871 = vmatprep.subr.bf16.mxu1 %v1956_v10  ;;  %1894 = vmatpush3.bf16.msra.mxu0 %v1893_v38 }
 0x4c1   : > { %1895 = vmatprep.subr.bf16.mxu0 %v1956_v10 }
 0x57c   : > { %v774_v41 = vpop.f32.mrb[4].mxu1 }
 0x57d   : > { %v1771_v42 = vpop.f32.mrb[5].mxu1 }
 0x57e   : > { %v1523_v42 = vld [vmem:[%s2303_s12 + $0x70] sm:$0xff] }
 0x57f   : > { %v1899_v44 = vpack.c.bf16 %v1524_v43, %v1523_v42 }
 0x585   : > { %v943_v46 = vpop.f32.mrb[6].mxu1 }
 0x586   : > { %1286 = vrot.lane.b32.xlu0 %v943_v46, %s1970_s16  ;;  %v1781_v47 = vpop.f32.mrb[7].mxu1 }
 0x589   : > { %v1112_v48 = vpop.f32.mrb[8].mxu1 }
 0x58a   : > { %1290 = vrot.lane.b32.xlu1 %v1112_v48, %s1971_s17  ;;  %v1791_v49 = vpop.f32.mrb[9].mxu1 }
 0x58d   : > { %v1281_v50 = vpop.f32.mrb[10].mxu1 }
 0x58e   : > { %1294 = vrot.lane.b32.xlu0 %v1281_v50, %s1972_s18  ;;  %v1801_v51 = vpop.f32.mrb[11].mxu1 }
 0x5f8   : > { %v1287_v52 = vpop.permute.xlu0 %1286 }
 0x5f9   : > { %v1297_v54 = vsel %vm603_vm3, %v774_v41, %v1287_v52  ;;  %v1896_v41 = vpack.c.bf16 %v1522_v40, %v1521_v39 }
 0x5fb   : > { %1897 = vmatpush3.bf16.msra.mxu0 %v1896_v41 }
 0x5fc   : > { %v1291_v53 = vpop.permute.xlu1 %1290  ;;  %1898 = vmatprep.subr.bf16.mxu0 %v1956_v10 }
 0x5fd   : > { %v1299_v55 = vsel %vm1298_vm8, %v1297_v54, %v1291_v53 }
 0x5ff   : > { %1900 = vmatpush3.bf16.msra.mxu0 %v1899_v44 }
 0x600   : > { %v1295_v56 = vpop.permute.xlu0 %1294 }
 0x601   : > { %v1301_v57 = vsel %vm1300_vm9, %v1299_v55, %v1295_v56 }
 0x602   : > { %1811 = vmatmul.mubr.msk.f32.vlgmr.msra.gmra.mrb[12].mxu1 %vm520_vm2, %v1301_v57 }
 0x603   : > { %1821 = vmatprep.mubr.msk.f32.mxu1 %vm1957_vm1, %v1958_v13 }
 0x6d5   : > { %v1382_v59 = vpop.f32.mrb[12].mxu1 }
 0x6d6   : > { %v1383_v60 = vadd.f32 %v1694_v58, %v1382_v59  ;;  %v1812_v61 = vpop.f32.mrb[13].mxu1 }
 0x6d8   : > { %v2194_v62 = vadd.f32 %v1383_v60, %v2064_v0  ;;  %v1417_v0 = vld [vmem:[%s2301_s10 + $0x8] sm:$0xff] }
 0x6d9   : > { %v1872_v6 = vpack.c.bf16 %v1417_v0, %v1416_v5 }
 0x6da   : > { %v1389_v63 = vsel %vm480_vm0, %v2194_v62, 0.0 }
 0x6db   : > { %1390 = vadd.xlane.f32.xlu1 %v1389_v63  ;;  %1873 = vmatpush3.bf16.msra.mxu1 %v1872_v6 }
 0x6dc   : > { %1874 = vmatprep.subr.bf16.mxu1 %v1956_v10  ;;  %v1700_v10 = vld [vmem:[%s2304_s13] ss:$0 sm:$0xff] }
 0x6df   : > { %1876 = vmatpush3.bf16.msra.mxu1 %v1875_v9 }
 0x768   : > { %v1391_v1 = vpop.xlane.xlu1 %1390 }
 0x769   : > { %v1392_v2 = vmul.f32 0.03125, %v1391_v1 }
 0x76b   : > { %v1393_v3 = vsub.f32 %v2194_v62, %v1392_v2 }
 0x76d   : > { %v1394_v4 = vmul.f32 %v1393_v3, %v1393_v3 }
 0x76f   : > { %v1395_v13 = vsel %vm480_vm0, %v1394_v4, 0.0 }
 0x770   : > { %1396 = vadd.xlane.f32.xlu0 %v1395_v13 }
 0x7fd   : > { %v1397_v15 = vpop.xlane.xlu0 %1396 }
 0x7fe   : > { %v1398_v16 = vmul.f32 0.03125, %v1397_v15 }
 0x800   : > { %v1399_v17 = vadd.f32 1e-05, %v1398_v16 }
 0x802   : > { %1944 = vrsqrt.f32 %v1399_v17 }
 0x80c   : > { %v1945_v18 = vpop.eup %1944 }
 0x80d   : > { %v1401_v20 = vmul.f32 %v1945_v18, %v1393_v3 }
 0x80f   : > { %v1408_v22 = vmul.f32 %v1696_v19, %v1401_v20 }
 0x811   : > { %v1415_v23 = vadd.f32 %v1697_v21, %v1408_v22 }
 0x813   : > { %1822 = vmatmul.mubr.msk.f32.vlgmr.msra.gmra.mrb[14].mxu1 %vm520_vm2, %v1415_v23 }
 0x8e6   : > { %v1496_v46 = vpop.f32.mrb[14].mxu1 }
 0x8e7   : > { %v1497_v47 = vadd.f32 %v1698_v45, %v1496_v46  ;;  %v1823_v48 = vpop.f32.mrb[15].mxu1 }
 0x8e9   : > { %v1501_v49 = vmul.f32 %v1497_v47, %v1497_v47  ;;  %v1500_v55 = vmul.f32 0.5, %v1497_v47 }
 0x8eb   : > { %v1502_v50 = vmul.f32 %v1501_v49, %v1497_v47 }
 0x8ed   : > { %v1503_v51 = vmul.f32 0.044715, %v1502_v50 }
 0x8ef   : > { %v1504_v52 = vadd.f32 %v1503_v51, %v1497_v47 }
 0x8f1   : > { %v1505_v53 = vmul.f32 0.7978846, %v1504_v52 }
 0x8f3   : > { %1946 = vtanh.f32 %v1505_v53 }
 0x8fd   : > { %v1947_v54 = vpop.eup %1946 }
 0x8fe   : > { %v1507_v56 = vadd.f32 1.0, %v1947_v54 }
 0x900   : > { %v1508_v57 = vmul.f32 %v1507_v56, %v1500_v55 }
 0x902   : > { %1857 = vmatmul.mubr.f32.vlgmr.msra.gmra.mrb[6].mxu0 %v1508_v57 }
 0x9d5   : > { %v1598_v58 = vpop.f32.mrb[6].mxu0 }
 0x9d6   : > { %v1599_v59 = vadd.f32 %v1700_v10, %v1598_v58  ;;  %v1858_v60 = vpop.f32.mrb[7].mxu0 }
 0x9d8   : > { %v1602_v61 = vadd.f32 %v1599_v59, %v2194_v62 }
 0x9da   : > { %1603 = vst.msk [vmem:[%s476_s19] sm:$0xf] %vm480_vm0, %v1602_v61 }
 0x9db PF: > { %s24_s29 = sadd.s32 1, %s1954_s29  }
 0x9dc   : > { %p21_p4 = scmp.ge.s32.totalorder %s24_s29, 4  }
 0x9de   :  { %23 = sbr.rel (!%p21_p4) target bundleno = 1 (0x1), region = 109 }

// kernel: dpks_forward.12
= control target key start
LH: loop header
LB: loop body
LE: loop exit
PB: predicated region body
PF: predicated region fallthrough
CT: control target
= control target key end

     0   :  { %vm25_vm0 = vcmask 523264   ;;  %s299_s1 = inlined_call_operand.vmem [shape: f32[64,128], index: 1, kind: input, shape index: {}]   ;;  %s300_s0 = inlined_call_operand.vmem [shape: f32[42,64], index: 0, kind: input, shape index: {}]   ;;  %s301_s2 = inlined_call_operand.vmem [shape: f32[42,128], index: 2, kind: output, shape index: {}]  }
   0x1   :  { %v17_v0 = vld [vmem:[%s299_s1] sm:$0xff]  ;;  %v18_v1 = vld [vmem:[%s299_s1 + $0x8] sm:$0xff]  ;;  %v19_v2 = vld [vmem:[%s299_s1 + $0x10] sm:$0xff] }
   0x2   :  { %v194_v3 = vpack.c.bf16 %v18_v1, %v17_v0  ;;  %v20_v4 = vld [vmem:[%s299_s1 + $0x18] sm:$0xff]  ;;  %v21_v6 = vld [vmem:[%s299_s1 + $0x20] sm:$0xff]  ;;  %v22_v7 = vld [vmem:[%s299_s1 + $0x28] sm:$0xff] }
   0x3   :  { %v198_v5 = vpack.c.bf16 %v20_v4, %v19_v2  ;;  %v13_v8 = vld [vmem:[%s300_s0 + $0x10] sm:$0xff]  ;;  %v11_v9 = vld [vmem:[%s300_s0] sm:$0xff]  ;;  %v202_v10 = vpack.c.bf16 %v22_v7, %v21_v6  ;;  %v24_v12 = vld [vmem:[%s299_s1 + $0x38] sm:$0xff] }
   0x4   :  { %210 = vmatprep.subr.bf16.mxu1 %v194_v3  ;;  %195 = vmatprep.subr.bf16.mxu0 %v194_v3  ;;  %v23_v11 = vld [vmem:[%s299_s1 + $0x30] sm:$0xff]  ;;  %v14_v14 = vld [vmem:[%s300_s0 + $0x18] sm:$0xff]  ;;  %v12_v15 = vld [vmem:[%s300_s0 + $0x8] sm:$0xff] }
   0x5   :  { %214 = vmatpush3.bf16.msra.mxu1 %v194_v3  ;;  %197 = vmatpush3.bf16.msra.mxu0 %v194_v3  ;;  %v206_v13 = vpack.c.bf16 %v24_v12, %v23_v11  ;;  %v15_v16 = vld [vmem:[%s300_s0 + $0x20] sm:$0xff]  ;;  %v16_v17 = vld [vmem:[%s300_s0 + $0x28] sm:$0x3] }
   0x6   :  { %211 = vmatprep.subr.bf16.mxu1 %v198_v5  ;;  %199 = vmatprep.subr.bf16.mxu0 %v198_v5 }
   0x7   :  { %188 = vmatprep.mubr.msk.f32.mxu1 %vm25_vm0, %v13_v8  ;;  %185 = vmatprep.mubr.msk.f32.mxu0 %vm25_vm0, %v11_v9 }
   0x9   :  { %215 = vmatpush3.bf16.msra.mxu1 %v198_v5  ;;  %201 = vmatpush3.bf16.msra.mxu0 %v198_v5 }
   0xa   :  { %212 = vmatprep.subr.bf16.mxu1 %v202_v10  ;;  %203 = vmatprep.subr.bf16.mxu0 %v202_v10 }
   0xd   :  { %216 = vmatpush3.bf16.msra.mxu1 %v202_v10  ;;  %205 = vmatpush3.bf16.msra.mxu0 %v202_v10 }
   0xe   :  { %213 = vmatprep.subr.bf16.mxu1 %v206_v13  ;;  %207 = vmatprep.subr.bf16.mxu0 %v206_v13 }
  0x11   :  { %217 = vmatpush3.bf16.msra.mxu1 %v206_v13  ;;  %209 = vmatpush3.bf16.msra.mxu0 %v206_v13 }
  0x14   :  { %189 = vmatmul.mubr.msk.f32.vlgmr.msra.gmra.mrb[0].mxu1 %vm25_vm0, %v14_v14  ;;  %186 = vmatmul.mubr.msk.f32.vlgmr.msra.gmra.mrb[0].mxu0 %vm25_vm0, %v12_v15 }
  0x15   :  { %191 = vmatprep.mubr.msk.f32.mxu1 %vm25_vm0, %v15_v16 }
  0x18   :  { %192 = vmatmul.mubr.msk.f32.gmra.mrb[2].mxu1 %vm25_vm0, %v16_v17 }
  0xe7   :  { %v190_v18 = vpop.f32.mrb[0].mxu1  ;;  %v187_v19 = vpop.f32.mrb[0].mxu0 }
  0xe8   :  { %142 = vst [vmem:[%s301_s2 + $0x18] sm:$0xff] %v190_v18  ;;  %v120_v20 = vpop.f32.mrb[1].mxu1  ;;  %140 = vst [vmem:[%s301_s2 + $0x8] sm:$0xff] %v187_v19  ;;  %v110_v21 = vpop.f32.mrb[1].mxu0 }
  0xe9   :  { %141 = vst [vmem:[%s301_s2 + $0x10] sm:$0xff] %v120_v20  ;;  %139 = vst [vmem:[%s301_s2] sm:$0xff] %v110_v21 }
  0xeb   :  { %v193_v22 = vpop.f32.mrb[2].mxu1 }
  0xec   :  { %144 = vst [vmem:[%s301_s2 + $0x28] sm:$0x3] %v193_v22  ;;  %v130_v23 = vpop.f32.mrb[3].mxu1 }
  0xed   :  { %143 = vst [vmem:[%s301_s2 + $0x20] sm:$0xff] %v130_v23 }

// kernel: dpks_forward.13
= control target key start
LH: loop header
LB: loop body
LE: loop exit
PB: predicated region body
PF: predicated region fallthrough
CT: control target
= control target key end

     0   :  { %v121_v0 = vmov 0.0|0.0   ;;  %vm122_vm0 = vmmov 0   ;;  %v123_v4 = vmov 0.0   ;;  %vm16_vm1 = vcmask 261120   ;;  %s157_s1 = inlined_call_operand.vmem [shape: f32[32,128], index: 1, kind: input, shape index: {}]   ;;  %s158_s0 = inlined_call_operand.vmem [shape: f32[6,32], index: 0, kind: input, shape index: {}]   ;;  %s159_s2 = inlined_call_operand.vmem [shape: f32[6,128], index: 2, kind: output, shape index: {}]  }
   0x1   :  { %112 = vmatprep.subr.bf16.mxu0 %v121_v0  ;;  %v12_v1 = vld [vmem:[%s157_s1] sm:$0xff]  ;;  %v13_v2 = vld [vmem:[%s157_s1 + $0x8] sm:$0xff]  ;;  %v14_v3 = vld [vmem:[%s157_s1 + $0x10] sm:$0xff]  ;;  %109 = vmatprep.mubr.msk.f32.mxu0 %vm122_vm0, %v123_v4 }
   0x2   :  { %v113_v5 = vpack.c.bf16 %v13_v2, %v12_v1  ;;  %v15_v6 = vld [vmem:[%s157_s1 + $0x18] sm:$0xff]  ;;  %v11_v8 = vld [vmem:[%s158_s0] sm:$0x3f] }
   0x3   :  { %v116_v7 = vpack.c.bf16 %v15_v6, %v14_v3 }
   0x4   :  { %114 = vmatpush3.bf16.msra.mxu0 %v113_v5 }
   0x5   :  { %115 = vmatprep.subr.bf16.mxu0 %v121_v0 }
   0x8   :  { %117 = vmatpush3.bf16.msra.mxu0 %v116_v7 }
   0xb   :  { %110 = vmatmul.mubr.msk.f32.vlgmr.msra.gmra.mrb[0].mxu0 %vm16_vm1, %v11_v8 }
  0xde   :  { %v86_v9 = vpop.f32.mrb[0].mxu0 }
  0xdf   :  { %90 = vst [vmem:[%s159_s2] sm:$0x3f] %v86_v9  ;;  %v111_v10 = vpop.f32.mrb[1].mxu0 }

</bundles_post_ra>
